<compile_context>
chip_gen: v7x
topology: tpu7x:2x2x1
jax: 0.10.0
libtpu: 0.0.40
codegen_flags: <defaults>
</compile_context>

<pallas_src>
import math

import jax
import jax.numpy as jnp
from jax.experimental import pallas as pl
from jax.experimental.pallas import tpu as pltpu

# small, CLIP-consistent synthetic sizes
B, S, D = 2, 8, 32          # batch, sequence, transformer width
H = 4                        # attention heads
HD = D // H                  # head dim
L = 2                        # transformer layers
D_OUT = 32                   # text projection output dim
D_OUT_PAD = 128              # lane-dense padded output width
LN_EPS = 1e-5


def _layernorm(x, w, b):
    mu = jnp.mean(x, axis=-1, keepdims=True)
    var = jnp.mean(jnp.square(x - mu), axis=-1, keepdims=True)
    return (x - mu) * jax.lax.rsqrt(var + LN_EPS) * w + b


def text_encoder_kernel(
    eot_ref,                  # SMEM (B,) int32 (scalar prefetch)
    prompts_ref,              # (1, S, D)  f32   current batch row
    pos_ref,                  # (S, D)     f32
    ln1_w_ref, ln1_b_ref,     # (1, 1, D)  f32   current layer
    w_in_ref, b_in_ref,       # (1, D, 3D) bf16, (1, 1, 3D) f32
    w_out_ref, b_out_ref,     # (1, D, D)  bf16, (1, 1, D)  f32
    ln2_w_ref, ln2_b_ref,     # (1, 1, D)  f32
    w_fc_ref, b_fc_ref,       # (1, D, 4D) bf16, (1, 1, 4D) f32
    w_proj_ref, b_proj_ref,   # (1, 4D, D) bf16, (1, 1, D)  f32
    lnf_w_ref, lnf_b_ref,     # (1, D)     f32
    tproj_ref,                # (D, D_OUT_PAD) bf16 (zero-padded lanes)
    out_ref,                  # (1, 8, D_OUT_PAD) f32
    x_ref,                    # scratch VMEM (S, D) f32 — residual stream
):
    f32 = jnp.float32
    bf16 = jnp.bfloat16
    b = pl.program_id(0)
    l = pl.program_id(1)

    @pl.when(l == 0)
    def _init():
        x_ref[...] = prompts_ref[0] + pos_ref[...]          # prompts + pos_emb

    # CLIP causal mask: entries above the diagonal masked out (f32 scores).
    row = jax.lax.broadcasted_iota(jnp.int32, (S, S), 0)
    col = jax.lax.broadcasted_iota(jnp.int32, (S, S), 1)
    mask = jnp.where(col > row, f32(-1e9), f32(0.0))

    x = x_ref[...]

    # ---------- pre-LN multi-head causal self-attention ----------
    h = _layernorm(x, ln1_w_ref[0, 0], ln1_b_ref[0, 0])
    qkv = jnp.dot(h.astype(bf16), w_in_ref[0], preferred_element_type=f32)
    qkv = qkv + b_in_ref[0, 0]                               # (S, 3D)
    q = qkv[:, 0 * D:1 * D]
    k = qkv[:, 1 * D:2 * D]
    v = qkv[:, 2 * D:3 * D]

    scale = f32(1.0 / math.sqrt(HD))
    head_outs = []
    for hh in range(H):                                      # static lane slices per head
        sl = slice(hh * HD, (hh + 1) * HD)
        qh, kh, vh = q[:, sl], k[:, sl], v[:, sl]
        sc = jax.lax.dot_general(qh, kh, (((1,), (1,)), ((), ())),
                                 preferred_element_type=f32) * scale + mask
        mx = jnp.max(sc, axis=-1, keepdims=True)
        e = jnp.exp(sc - mx)
        denom = jnp.sum(e, axis=-1, keepdims=True)
        p = e * pl.reciprocal(denom, approx=True)            # EUP, not VALU divide
        head_outs.append(jnp.dot(p, vh, preferred_element_type=f32))
    ctx = jnp.concatenate(head_outs, axis=-1)                # (S, D)

    attn = jnp.dot(ctx.astype(bf16), w_out_ref[0], preferred_element_type=f32)
    attn = attn + b_out_ref[0, 0]
    x = x + attn

    # ---------- pre-LN MLP with QuickGELU ----------
    h2 = _layernorm(x, ln2_w_ref[0, 0], ln2_b_ref[0, 0])
    a = jnp.dot(h2.astype(bf16), w_fc_ref[0], preferred_element_type=f32)
    a = a + b_fc_ref[0, 0]
    a = a * jax.nn.sigmoid(1.702 * a)                        # QuickGELU (f32, EUP)
    m = jnp.dot(a.astype(bf16), w_proj_ref[0], preferred_element_type=f32)
    m = m + b_proj_ref[0, 0]
    x = x + m

    x_ref[...] = x

    # ---------- finalize: ln_final, EOT gather, text projection ----------
    @pl.when(l == L - 1)
    def _final():
        xf = _layernorm(x, lnf_w_ref[0], lnf_b_ref[0])
        x_ref[...] = xf
        eot = eot_ref[b]
        pooled = x_ref[pl.ds(eot, 1), :]                     # (1, D) dynamic row gather
        proj = jnp.dot(pooled.astype(bf16), tproj_ref[...],
                       preferred_element_type=f32)           # (1, D_OUT_PAD)
        out_ref[0] = jnp.broadcast_to(proj, (8, D_OUT_PAD))  # lane-dense (8,128) store


def init_params(key):
    ks = jax.random.split(key, 8)
    bf16 = jnp.bfloat16

    def nrm(k, shape, scale=0.02, dtype=jnp.float32):
        return (scale * jax.random.normal(k, shape)).astype(dtype)

    return dict(
        pos=nrm(ks[0], (S, D)),
        ln1_w=jnp.ones((L, 1, D), jnp.float32),
        ln1_b=jnp.zeros((L, 1, D), jnp.float32),
        # weights stored pre-transposed (x @ W form) and in bf16 for the MXU
        w_in=nrm(ks[1], (L, D, 3 * D), dtype=bf16),
        b_in=jnp.zeros((L, 1, 3 * D), jnp.float32),
        w_out=nrm(ks[2], (L, D, D), dtype=bf16),
        b_out=jnp.zeros((L, 1, D), jnp.float32),
        ln2_w=jnp.ones((L, 1, D), jnp.float32),
        ln2_b=jnp.zeros((L, 1, D), jnp.float32),
        w_fc=nrm(ks[3], (L, D, 4 * D), dtype=bf16),
        b_fc=jnp.zeros((L, 1, 4 * D), jnp.float32),
        w_proj=nrm(ks[4], (L, 4 * D, D), dtype=bf16),
        b_proj=jnp.zeros((L, 1, D), jnp.float32),
        lnf_w=jnp.ones((1, D), jnp.float32),
        lnf_b=jnp.zeros((1, D), jnp.float32),
        # text_projection zero-padded on the lane dim to 128
        tproj=jnp.zeros((D, D_OUT_PAD), bf16).at[:, :D_OUT].set(
            nrm(ks[5], (D, D_OUT), dtype=bf16)),
    )


def text_encoder(prompts, tokenized_prompts, params):
    """prompts: (B,S,D) f32 (already-embedded), tokenized_prompts: (B,S) i32."""
    eot_idx = jnp.argmax(tokenized_prompts, axis=-1).astype(jnp.int32)   # (B,)

    inputs = [
        prompts, params['pos'],
        params['ln1_w'], params['ln1_b'],
        params['w_in'], params['b_in'],
        params['w_out'], params['b_out'],
        params['ln2_w'], params['ln2_b'],
        params['w_fc'], params['b_fc'],
        params['w_proj'], params['b_proj'],
        params['lnf_w'], params['lnf_b'],
        params['tproj'],
    ]

    def _shared(shape):
        r = len(shape)
        return pl.BlockSpec(shape, lambda b, l, eot, _r=r: (0,) * _r)

    def _per_layer(shape):
        blk = (1,) + tuple(shape[1:])
        r = len(shape)
        return pl.BlockSpec(blk, lambda b, l, eot, _r=r: (l,) + (0,) * (_r - 1))

    in_specs = [
        pl.BlockSpec((1, S, D), lambda b, l, eot: (b, 0, 0)),   # prompts (per batch row)
        _shared(params['pos'].shape),
        _per_layer(params['ln1_w'].shape),
        _per_layer(params['ln1_b'].shape),
        _per_layer(params['w_in'].shape),
        _per_layer(params['b_in'].shape),
        _per_layer(params['w_out'].shape),
        _per_layer(params['b_out'].shape),
        _per_layer(params['ln2_w'].shape),
        _per_layer(params['ln2_b'].shape),
        _per_layer(params['w_fc'].shape),
        _per_layer(params['b_fc'].shape),
        _per_layer(params['w_proj'].shape),
        _per_layer(params['b_proj'].shape),
        _shared(params['lnf_w'].shape),
        _shared(params['lnf_b'].shape),
        _shared(params['tproj'].shape),
    ]
    out_spec = pl.BlockSpec((1, 8, D_OUT_PAD), lambda b, l, eot: (b, 0, 0))

    flops_per_step = (2 * S * D * 3 * D            # qkv proj
                      + 2 * 2 * H * S * S * HD     # scores + context
                      + 2 * S * D * D              # out proj
                      + 2 * 2 * S * D * 4 * D)     # MLP fc + proj
    cost = pl.CostEstimate(
        flops=int(B * L * flops_per_step + B * 2 * D * D_OUT_PAD),
        transcendentals=int(B * L * (H * S * S + S * 4 * D)),
        bytes_accessed=int(sum(int(a.size) * a.dtype.itemsize for a in inputs)
                           + B * 8 * D_OUT_PAD * 4),
    )

    res = pl.pallas_call(
        text_encoder_kernel,
        out_shape=jax.ShapeDtypeStruct((B, 8, D_OUT_PAD), jnp.float32),
        grid_spec=pltpu.PrefetchScalarGridSpec(
            num_scalar_prefetch=1,
            grid=(B, L),                               # batch (parallel), layers (streamed)
            in_specs=in_specs,
            out_specs=out_spec,
            scratch_shapes=[pltpu.VMEM((S, D), jnp.float32)],
        ),
        compiler_params=pltpu.CompilerParams(
            dimension_semantics=("parallel", "arbitrary")),
        cost_estimate=cost,
    )(eot_idx, *inputs)
    return res[:, 0, :D_OUT]


if __name__ == "__main__":
    key = jax.random.PRNGKey(0)
    k_param, k_prompt, k_tok = jax.random.split(key, 3)

    params = init_params(k_param)
    prompts = (0.1 * jax.random.normal(k_prompt, (B, S, D))).astype(jnp.float32)
    tokenized_prompts = jax.random.randint(k_tok, (B, S), 1, 100, dtype=jnp.int32)
    # simulate EOT token (largest id) at distinct positions per row
    tokenized_prompts = tokenized_prompts.at[0, 5].set(1000).at[1, 7].set(1000)

    out = text_encoder(prompts, tokenized_prompts, params)
    out = jax.block_until_ready(out)
    assert out.shape == (B, D_OUT) and bool(jnp.all(jnp.isfinite(out)))
    print("KERNEL_OK")
</pallas_src>

<mosaic_0001>
module attributes {stable_mosaic.version = 11 : i64} {
  func.func @text_encoder_kernel(%arg0: i32, %arg1: i32, %arg2: memref<2xi32, #tpu.memory_space<smem>>, %arg3: memref<1x8x32xf32, #tpu.memory_space<vmem>>, %arg4: memref<8x32xf32, #tpu.memory_space<vmem>>, %arg5: memref<1x1x32xf32, #tpu.memory_space<vmem>>, %arg6: memref<1x1x32xf32, #tpu.memory_space<vmem>>, %arg7: memref<1x32x96xbf16, #tpu.memory_space<vmem>>, %arg8: memref<1x1x96xf32, #tpu.memory_space<vmem>>, %arg9: memref<1x32x32xbf16, #tpu.memory_space<vmem>>, %arg10: memref<1x1x32xf32, #tpu.memory_space<vmem>>, %arg11: memref<1x1x32xf32, #tpu.memory_space<vmem>>, %arg12: memref<1x1x32xf32, #tpu.memory_space<vmem>>, %arg13: memref<1x32x128xbf16, #tpu.memory_space<vmem>>, %arg14: memref<1x1x128xf32, #tpu.memory_space<vmem>>, %arg15: memref<1x128x32xbf16, #tpu.memory_space<vmem>>, %arg16: memref<1x1x32xf32, #tpu.memory_space<vmem>>, %arg17: memref<1x32xf32, #tpu.memory_space<vmem>>, %arg18: memref<1x32xf32, #tpu.memory_space<vmem>>, %arg19: memref<32x128xbf16, #tpu.memory_space<vmem>>, %arg20: memref<1x8x128xf32, #tpu.memory_space<vmem>>, %arg21: memref<8x32xf32, #tpu.memory_space<vmem>>) attributes {dimension_semantics = [#tpu.dimension_semantics<parallel>, #tpu.dimension_semantics<arbitrary>], iteration_bounds = array<i64: 2, 2>, scalar_prefetch = 1 : i64, scratch_operands = 1 : i64, tpu.core_type = #tpu.core_type<tc>, window_params = [{transform_indices = @transform_0, window_bounds = array<i64: 1, 8, 32>}, {pipeline_mode = #tpu.pipeline_mode<synchronous>, transform_indices = @transform_1, window_bounds = array<i64: 8, 32>}, {transform_indices = @transform_2, window_bounds = array<i64: 1, 1, 32>}, {transform_indices = @transform_3, window_bounds = array<i64: 1, 1, 32>}, {transform_indices = @transform_4, window_bounds = array<i64: 1, 32, 96>}, {transform_indices = @transform_5, window_bounds = array<i64: 1, 1, 96>}, {transform_indices = @transform_6, window_bounds = array<i64: 1, 32, 32>}, {transform_indices = @transform_7, window_bounds = array<i64: 1, 1, 32>}, {transform_indices = @transform_8, window_bounds = array<i64: 1, 1, 32>}, {transform_indices = @transform_9, window_bounds = array<i64: 1, 1, 32>}, {transform_indices = @transform_10, window_bounds = array<i64: 1, 32, 128>}, {transform_indices = @transform_11, window_bounds = array<i64: 1, 1, 128>}, {transform_indices = @transform_12, window_bounds = array<i64: 1, 128, 32>}, {transform_indices = @transform_13, window_bounds = array<i64: 1, 1, 32>}, {pipeline_mode = #tpu.pipeline_mode<synchronous>, transform_indices = @transform_14, window_bounds = array<i64: 1, 32>}, {pipeline_mode = #tpu.pipeline_mode<synchronous>, transform_indices = @transform_15, window_bounds = array<i64: 1, 32>}, {pipeline_mode = #tpu.pipeline_mode<synchronous>, transform_indices = @transform_16, window_bounds = array<i64: 32, 128>}, {transform_indices = @transform_17, window_bounds = array<i64: 1, 8, 128>}]} {
    %c0_i32 = arith.constant 0 : i32
    %0 = arith.cmpi eq, %arg1, %c0_i32 : i32
    %1 = arith.extui %0 : i1 to i32
    %c0_i32_0 = arith.constant 0 : i32
    %2 = arith.cmpi ne, %1, %c0_i32_0 : i32
    scf.if %2 {
      %c0_78 = arith.constant 0 : index
      %c0_79 = arith.constant 0 : index
      %c0_80 = arith.constant 0 : index
      %192 = vector.load %arg3[%c0_78, %c0_79, %c0_80] : memref<1x8x32xf32, #tpu.memory_space<vmem>>, vector<1x8x32xf32>
      %193 = vector.shape_cast %192 : vector<1x8x32xf32> to vector<8x32xf32>
      %c0_81 = arith.constant 0 : index
      %c0_82 = arith.constant 0 : index
      %194 = vector.load %arg4[%c0_81, %c0_82] : memref<8x32xf32, #tpu.memory_space<vmem>>, vector<8x32xf32>
      %195 = arith.addf %193, %194 : vector<8x32xf32>
      %c0_83 = arith.constant 0 : index
      %c0_84 = arith.constant 0 : index
      %196 = vector.load %arg21[%c0_83, %c0_84] : memref<8x32xf32, #tpu.memory_space<vmem>>, vector<8x32xf32>
      tpu.vector_store %arg21[%c0_83, %c0_84], %195 {strides = array<i32>} : memref<8x32xf32, #tpu.memory_space<vmem>>, vector<8x32xf32>,
    } else {
    }
    %3 = tpu.iota {dimensions = array<i32: 0>} : vector<8x8xi32>
    %4 = tpu.iota {dimensions = array<i32: 1>} : vector<8x8xi32>
    %5 = arith.cmpi sgt, %4, %3 : vector<8x8xi32>
    %cst = arith.constant -1.000000e+09 : f32
    %cst_1 = arith.constant 0.000000e+00 : f32
    %6 = vector.broadcast %cst : f32 to vector<8x8xf32>
    %7 = vector.broadcast %cst_1 : f32 to vector<8x8xf32>
    %8 = arith.select %5, %6, %7 : vector<8x8xi1>, vector<8x8xf32>
    %c0 = arith.constant 0 : index
    %c0_2 = arith.constant 0 : index
    %9 = vector.load %arg21[%c0, %c0_2] : memref<8x32xf32, #tpu.memory_space<vmem>>, vector<8x32xf32>
    %c0_3 = arith.constant 0 : index
    %c0_4 = arith.constant 0 : index
    %c0_5 = arith.constant 0 : index
    %10 = vector.load %arg5[%c0_3, %c0_4, %c0_5] : memref<1x1x32xf32, #tpu.memory_space<vmem>>, vector<1x1x32xf32>
    %11 = vector.shape_cast %10 : vector<1x1x32xf32> to vector<32xf32>
    %c0_6 = arith.constant 0 : index
    %c0_7 = arith.constant 0 : index
    %c0_8 = arith.constant 0 : index
    %12 = vector.load %arg6[%c0_6, %c0_7, %c0_8] : memref<1x1x32xf32, #tpu.memory_space<vmem>>, vector<1x1x32xf32>
    %13 = vector.shape_cast %12 : vector<1x1x32xf32> to vector<32xf32>
    %cst_9 = arith.constant dense<0.000000e+00> : vector<8xf32>
    %14 = vector.multi_reduction <add>, %9, %cst_9 [1] : vector<8x32xf32> to vector<8xf32>
    %15 = vector.shape_cast %14 : vector<8xf32> to vector<8x1xf32>
    %cst_10 = arith.constant 3.200000e+01 : f32
    %16 = vector.broadcast %cst_10 : f32 to vector<8x1xf32>
    %17 = arith.divf %15, %16 : vector<8x1xf32>
    %18 = vector.broadcast %17 : vector<8x1xf32> to vector<8x32xf32>
    %19 = arith.subf %9, %18 : vector<8x32xf32>
    %20 = arith.mulf %19, %19 : vector<8x32xf32>
    %cst_11 = arith.constant dense<0.000000e+00> : vector<8xf32>
    %21 = vector.multi_reduction <add>, %20, %cst_11 [1] : vector<8x32xf32> to vector<8xf32>
    %22 = vector.shape_cast %21 : vector<8xf32> to vector<8x1xf32>
    %cst_12 = arith.constant 3.200000e+01 : f32
    %23 = vector.broadcast %cst_12 : f32 to vector<8x1xf32>
    %24 = arith.divf %22, %23 : vector<8x1xf32>
    %25 = vector.broadcast %17 : vector<8x1xf32> to vector<8x32xf32>
    %26 = arith.subf %9, %25 : vector<8x32xf32>
    %cst_13 = arith.constant 9.99999974E-6 : f32
    %27 = vector.broadcast %cst_13 : f32 to vector<8x1xf32>
    %28 = arith.addf %24, %27 : vector<8x1xf32>
    %29 = math.rsqrt %28 : vector<8x1xf32>
    %30 = vector.broadcast %29 : vector<8x1xf32> to vector<8x32xf32>
    %31 = arith.mulf %26, %30 : vector<8x32xf32>
    %32 = vector.shape_cast %11 : vector<32xf32> to vector<1x32xf32>
    %33 = vector.broadcast %32 : vector<1x32xf32> to vector<8x32xf32>
    %34 = arith.mulf %31, %33 : vector<8x32xf32>
    %35 = vector.shape_cast %13 : vector<32xf32> to vector<1x32xf32>
    %36 = vector.broadcast %35 : vector<1x32xf32> to vector<8x32xf32>
    %37 = arith.addf %34, %36 : vector<8x32xf32>
    %38 = arith.truncf %37 : vector<8x32xf32> to vector<8x32xbf16>
    %c0_14 = arith.constant 0 : index
    %c0_15 = arith.constant 0 : index
    %c0_16 = arith.constant 0 : index
    %39 = vector.load %arg7[%c0_14, %c0_15, %c0_16] : memref<1x32x96xbf16, #tpu.memory_space<vmem>>, vector<1x32x96xbf16>
    %40 = vector.shape_cast %39 : vector<1x32x96xbf16> to vector<32x96xbf16>
    %cst_17 = arith.constant dense<0.000000e+00> : vector<8x96xf32>
    %41 = tpu.matmul %38, %40, %cst_17 {dimension_numbers = #tpu.dot_dimension_numbers<[1], [0], [0], [1], [0, 0, 1, 1], [], []>} : vector<8x32xbf16>, vector<32x96xbf16>, vector<8x96xf32> -> vector<8x96xf32>
    %c0_18 = arith.constant 0 : index
    %c0_19 = arith.constant 0 : index
    %c0_20 = arith.constant 0 : index
    %42 = vector.load %arg8[%c0_18, %c0_19, %c0_20] : memref<1x1x96xf32, #tpu.memory_space<vmem>>, vector<1x1x96xf32>
    %43 = vector.shape_cast %42 : vector<1x1x96xf32> to vector<96xf32>
    %44 = vector.shape_cast %43 : vector<96xf32> to vector<1x96xf32>
    %45 = vector.broadcast %44 : vector<1x96xf32> to vector<8x96xf32>
    %46 = arith.addf %41, %45 : vector<8x96xf32>
    %47 = vector.extract_strided_slice %46 {offsets = [0, 0], sizes = [8, 32], strides = [1, 1]} : vector<8x96xf32> to vector<8x32xf32>
    %48 = vector.extract_strided_slice %46 {offsets = [0, 32], sizes = [8, 32], strides = [1, 1]} : vector<8x96xf32> to vector<8x32xf32>
    %49 = vector.extract_strided_slice %46 {offsets = [0, 64], sizes = [8, 32], strides = [1, 1]} : vector<8x96xf32> to vector<8x32xf32>
    %50 = vector.extract_strided_slice %47 {offsets = [0, 0], sizes = [8, 8], strides = [1, 1]} : vector<8x32xf32> to vector<8x8xf32>
    %51 = vector.extract_strided_slice %48 {offsets = [0, 0], sizes = [8, 8], strides = [1, 1]} : vector<8x32xf32> to vector<8x8xf32>
    %52 = vector.extract_strided_slice %49 {offsets = [0, 0], sizes = [8, 8], strides = [1, 1]} : vector<8x32xf32> to vector<8x8xf32>
    %cst_21 = arith.constant dense<0.000000e+00> : vector<8x8xf32>
    %53 = tpu.matmul %50, %51, %cst_21 {dimension_numbers = #tpu.dot_dimension_numbers<[1], [1], [0], [0], [0, 0, 1, 0], [], []>} : vector<8x8xf32>, vector<8x8xf32>, vector<8x8xf32> -> vector<8x8xf32>
    %cst_22 = arith.constant 0.353553385 : f32
    %54 = vector.broadcast %cst_22 : f32 to vector<8x8xf32>
    %55 = arith.mulf %53, %54 : vector<8x8xf32>
    %56 = arith.addf %55, %8 : vector<8x8xf32>
    %cst_23 = arith.constant dense<0xFF800000> : vector<8xf32>
    %57 = vector.multi_reduction <maximumf>, %56, %cst_23 [1] : vector<8x8xf32> to vector<8xf32>
    %58 = vector.shape_cast %57 : vector<8xf32> to vector<8x1xf32>
    %59 = vector.broadcast %58 : vector<8x1xf32> to vector<8x8xf32>
    %60 = arith.subf %56, %59 : vector<8x8xf32>
    %61 = math.exp %60 : vector<8x8xf32>
    %cst_24 = arith.constant dense<0.000000e+00> : vector<8xf32>
    %62 = vector.multi_reduction <add>, %61, %cst_24 [1] : vector<8x8xf32> to vector<8xf32>
    %63 = vector.shape_cast %62 : vector<8xf32> to vector<8x1xf32>
    %64 = tpu.reciprocal %63 {approx = true} : vector<8x1xf32> -> vector<8x1xf32>
    %65 = vector.broadcast %64 : vector<8x1xf32> to vector<8x8xf32>
    %66 = arith.mulf %61, %65 : vector<8x8xf32>
    %cst_25 = arith.constant dense<0.000000e+00> : vector<8x8xf32>
    %67 = tpu.matmul %66, %52, %cst_25 {dimension_numbers = #tpu.dot_dimension_numbers<[1], [0], [0], [1], [0, 0, 1, 1], [], []>} : vector<8x8xf32>, vector<8x8xf32>, vector<8x8xf32> -> vector<8x8xf32>
    %68 = vector.extract_strided_slice %47 {offsets = [0, 8], sizes = [8, 8], strides = [1, 1]} : vector<8x32xf32> to vector<8x8xf32>
    %69 = vector.extract_strided_slice %48 {offsets = [0, 8], sizes = [8, 8], strides = [1, 1]} : vector<8x32xf32> to vector<8x8xf32>
    %70 = vector.extract_strided_slice %49 {offsets = [0, 8], sizes = [8, 8], strides = [1, 1]} : vector<8x32xf32> to vector<8x8xf32>
    %cst_26 = arith.constant dense<0.000000e+00> : vector<8x8xf32>
    %71 = tpu.matmul %68, %69, %cst_26 {dimension_numbers = #tpu.dot_dimension_numbers<[1], [1], [0], [0], [0, 0, 1, 0], [], []>} : vector<8x8xf32>, vector<8x8xf32>, vector<8x8xf32> -> vector<8x8xf32>
    %cst_27 = arith.constant 0.353553385 : f32
    %72 = vector.broadcast %cst_27 : f32 to vector<8x8xf32>
    %73 = arith.mulf %71, %72 : vector<8x8xf32>
    %74 = arith.addf %73, %8 : vector<8x8xf32>
    %cst_28 = arith.constant dense<0xFF800000> : vector<8xf32>
    %75 = vector.multi_reduction <maximumf>, %74, %cst_28 [1] : vector<8x8xf32> to vector<8xf32>
    %76 = vector.shape_cast %75 : vector<8xf32> to vector<8x1xf32>
    %77 = vector.broadcast %76 : vector<8x1xf32> to vector<8x8xf32>
    %78 = arith.subf %74, %77 : vector<8x8xf32>
    %79 = math.exp %78 : vector<8x8xf32>
    %cst_29 = arith.constant dense<0.000000e+00> : vector<8xf32>
    %80 = vector.multi_reduction <add>, %79, %cst_29 [1] : vector<8x8xf32> to vector<8xf32>
    %81 = vector.shape_cast %80 : vector<8xf32> to vector<8x1xf32>
    %82 = tpu.reciprocal %81 {approx = true} : vector<8x1xf32> -> vector<8x1xf32>
    %83 = vector.broadcast %82 : vector<8x1xf32> to vector<8x8xf32>
    %84 = arith.mulf %79, %83 : vector<8x8xf32>
    %cst_30 = arith.constant dense<0.000000e+00> : vector<8x8xf32>
    %85 = tpu.matmul %84, %70, %cst_30 {dimension_numbers = #tpu.dot_dimension_numbers<[1], [0], [0], [1], [0, 0, 1, 1], [], []>} : vector<8x8xf32>, vector<8x8xf32>, vector<8x8xf32> -> vector<8x8xf32>
    %86 = vector.extract_strided_slice %47 {offsets = [0, 16], sizes = [8, 8], strides = [1, 1]} : vector<8x32xf32> to vector<8x8xf32>
    %87 = vector.extract_strided_slice %48 {offsets = [0, 16], sizes = [8, 8], strides = [1, 1]} : vector<8x32xf32> to vector<8x8xf32>
    %88 = vector.extract_strided_slice %49 {offsets = [0, 16], sizes = [8, 8], strides = [1, 1]} : vector<8x32xf32> to vector<8x8xf32>
    %cst_31 = arith.constant dense<0.000000e+00> : vector<8x8xf32>
    %89 = tpu.matmul %86, %87, %cst_31 {dimension_numbers = #tpu.dot_dimension_numbers<[1], [1], [0], [0], [0, 0, 1, 0], [], []>} : vector<8x8xf32>, vector<8x8xf32>, vector<8x8xf32> -> vector<8x8xf32>
    %cst_32 = arith.constant 0.353553385 : f32
    %90 = vector.broadcast %cst_32 : f32 to vector<8x8xf32>
    %91 = arith.mulf %89, %90 : vector<8x8xf32>
    %92 = arith.addf %91, %8 : vector<8x8xf32>
    %cst_33 = arith.constant dense<0xFF800000> : vector<8xf32>
    %93 = vector.multi_reduction <maximumf>, %92, %cst_33 [1] : vector<8x8xf32> to vector<8xf32>
    %94 = vector.shape_cast %93 : vector<8xf32> to vector<8x1xf32>
    %95 = vector.broadcast %94 : vector<8x1xf32> to vector<8x8xf32>
    %96 = arith.subf %92, %95 : vector<8x8xf32>
    %97 = math.exp %96 : vector<8x8xf32>
    %cst_34 = arith.constant dense<0.000000e+00> : vector<8xf32>
    %98 = vector.multi_reduction <add>, %97, %cst_34 [1] : vector<8x8xf32> to vector<8xf32>
    %99 = vector.shape_cast %98 : vector<8xf32> to vector<8x1xf32>
    %100 = tpu.reciprocal %99 {approx = true} : vector<8x1xf32> -> vector<8x1xf32>
    %101 = vector.broadcast %100 : vector<8x1xf32> to vector<8x8xf32>
    %102 = arith.mulf %97, %101 : vector<8x8xf32>
    %cst_35 = arith.constant dense<0.000000e+00> : vector<8x8xf32>
    %103 = tpu.matmul %102, %88, %cst_35 {dimension_numbers = #tpu.dot_dimension_numbers<[1], [0], [0], [1], [0, 0, 1, 1], [], []>} : vector<8x8xf32>, vector<8x8xf32>, vector<8x8xf32> -> vector<8x8xf32>
    %104 = vector.extract_strided_slice %47 {offsets = [0, 24], sizes = [8, 8], strides = [1, 1]} : vector<8x32xf32> to vector<8x8xf32>
    %105 = vector.extract_strided_slice %48 {offsets = [0, 24], sizes = [8, 8], strides = [1, 1]} : vector<8x32xf32> to vector<8x8xf32>
    %106 = vector.extract_strided_slice %49 {offsets = [0, 24], sizes = [8, 8], strides = [1, 1]} : vector<8x32xf32> to vector<8x8xf32>
    %cst_36 = arith.constant dense<0.000000e+00> : vector<8x8xf32>
    %107 = tpu.matmul %104, %105, %cst_36 {dimension_numbers = #tpu.dot_dimension_numbers<[1], [1], [0], [0], [0, 0, 1, 0], [], []>} : vector<8x8xf32>, vector<8x8xf32>, vector<8x8xf32> -> vector<8x8xf32>
    %cst_37 = arith.constant 0.353553385 : f32
    %108 = vector.broadcast %cst_37 : f32 to vector<8x8xf32>
    %109 = arith.mulf %107, %108 : vector<8x8xf32>
    %110 = arith.addf %109, %8 : vector<8x8xf32>
    %cst_38 = arith.constant dense<0xFF800000> : vector<8xf32>
    %111 = vector.multi_reduction <maximumf>, %110, %cst_38 [1] : vector<8x8xf32> to vector<8xf32>
    %112 = vector.shape_cast %111 : vector<8xf32> to vector<8x1xf32>
    %113 = vector.broadcast %112 : vector<8x1xf32> to vector<8x8xf32>
    %114 = arith.subf %110, %113 : vector<8x8xf32>
    %115 = math.exp %114 : vector<8x8xf32>
    %cst_39 = arith.constant dense<0.000000e+00> : vector<8xf32>
    %116 = vector.multi_reduction <add>, %115, %cst_39 [1] : vector<8x8xf32> to vector<8xf32>
    %117 = vector.shape_cast %116 : vector<8xf32> to vector<8x1xf32>
    %118 = tpu.reciprocal %117 {approx = true} : vector<8x1xf32> -> vector<8x1xf32>
    %119 = vector.broadcast %118 : vector<8x1xf32> to vector<8x8xf32>
    %120 = arith.mulf %115, %119 : vector<8x8xf32>
    %cst_40 = arith.constant dense<0.000000e+00> : vector<8x8xf32>
    %121 = tpu.matmul %120, %106, %cst_40 {dimension_numbers = #tpu.dot_dimension_numbers<[1], [0], [0], [1], [0, 0, 1, 1], [], []>} : vector<8x8xf32>, vector<8x8xf32>, vector<8x8xf32> -> vector<8x8xf32>
    %122 = tpu.concatenate %67, %85, %103, %121 in 1 : vector<8x8xf32>, vector<8x8xf32>, vector<8x8xf32>, vector<8x8xf32> -> vector<8x32xf32>
    %123 = arith.truncf %122 : vector<8x32xf32> to vector<8x32xbf16>
    %c0_41 = arith.constant 0 : index
    %c0_42 = arith.constant 0 : index
    %c0_43 = arith.constant 0 : index
    %124 = vector.load %arg9[%c0_41, %c0_42, %c0_43] : memref<1x32x32xbf16, #tpu.memory_space<vmem>>, vector<1x32x32xbf16>
    %125 = vector.shape_cast %124 : vector<1x32x32xbf16> to vector<32x32xbf16>
    %cst_44 = arith.constant dense<0.000000e+00> : vector<8x32xf32>
    %126 = tpu.matmul %123, %125, %cst_44 {dimension_numbers = #tpu.dot_dimension_numbers<[1], [0], [0], [1], [0, 0, 1, 1], [], []>} : vector<8x32xbf16>, vector<32x32xbf16>, vector<8x32xf32> -> vector<8x32xf32>
    %c0_45 = arith.constant 0 : index
    %c0_46 = arith.constant 0 : index
    %c0_47 = arith.constant 0 : index
    %127 = vector.load %arg10[%c0_45, %c0_46, %c0_47] : memref<1x1x32xf32, #tpu.memory_space<vmem>>, vector<1x1x32xf32>
    %128 = vector.shape_cast %127 : vector<1x1x32xf32> to vector<32xf32>
    %129 = vector.shape_cast %128 : vector<32xf32> to vector<1x32xf32>
    %130 = vector.broadcast %129 : vector<1x32xf32> to vector<8x32xf32>
    %131 = arith.addf %126, %130 : vector<8x32xf32>
    %132 = arith.addf %9, %131 : vector<8x32xf32>
    %c0_48 = arith.constant 0 : index
    %c0_49 = arith.constant 0 : index
    %c0_50 = arith.constant 0 : index
    %133 = vector.load %arg11[%c0_48, %c0_49, %c0_50] : memref<1x1x32xf32, #tpu.memory_space<vmem>>, vector<1x1x32xf32>
    %134 = vector.shape_cast %133 : vector<1x1x32xf32> to vector<32xf32>
    %c0_51 = arith.constant 0 : index
    %c0_52 = arith.constant 0 : index
    %c0_53 = arith.constant 0 : index
    %135 = vector.load %arg12[%c0_51, %c0_52, %c0_53] : memref<1x1x32xf32, #tpu.memory_space<vmem>>, vector<1x1x32xf32>
    %136 = vector.shape_cast %135 : vector<1x1x32xf32> to vector<32xf32>
    %cst_54 = arith.constant dense<0.000000e+00> : vector<8xf32>
    %137 = vector.multi_reduction <add>, %132, %cst_54 [1] : vector<8x32xf32> to vector<8xf32>
    %138 = vector.shape_cast %137 : vector<8xf32> to vector<8x1xf32>
    %cst_55 = arith.constant 3.200000e+01 : f32
    %139 = vector.broadcast %cst_55 : f32 to vector<8x1xf32>
    %140 = arith.divf %138, %139 : vector<8x1xf32>
    %141 = vector.broadcast %140 : vector<8x1xf32> to vector<8x32xf32>
    %142 = arith.subf %132, %141 : vector<8x32xf32>
    %143 = arith.mulf %142, %142 : vector<8x32xf32>
    %cst_56 = arith.constant dense<0.000000e+00> : vector<8xf32>
    %144 = vector.multi_reduction <add>, %143, %cst_56 [1] : vector<8x32xf32> to vector<8xf32>
    %145 = vector.shape_cast %144 : vector<8xf32> to vector<8x1xf32>
    %cst_57 = arith.constant 3.200000e+01 : f32
    %146 = vector.broadcast %cst_57 : f32 to vector<8x1xf32>
    %147 = arith.divf %145, %146 : vector<8x1xf32>
    %148 = vector.broadcast %140 : vector<8x1xf32> to vector<8x32xf32>
    %149 = arith.subf %132, %148 : vector<8x32xf32>
    %cst_58 = arith.constant 9.99999974E-6 : f32
    %150 = vector.broadcast %cst_58 : f32 to vector<8x1xf32>
    %151 = arith.addf %147, %150 : vector<8x1xf32>
    %152 = math.rsqrt %151 : vector<8x1xf32>
    %153 = vector.broadcast %152 : vector<8x1xf32> to vector<8x32xf32>
    %154 = arith.mulf %149, %153 : vector<8x32xf32>
    %155 = vector.shape_cast %134 : vector<32xf32> to vector<1x32xf32>
    %156 = vector.broadcast %155 : vector<1x32xf32> to vector<8x32xf32>
    %157 = arith.mulf %154, %156 : vector<8x32xf32>
    %158 = vector.shape_cast %136 : vector<32xf32> to vector<1x32xf32>
    %159 = vector.broadcast %158 : vector<1x32xf32> to vector<8x32xf32>
    %160 = arith.addf %157, %159 : vector<8x32xf32>
    %161 = arith.truncf %160 : vector<8x32xf32> to vector<8x32xbf16>
    %c0_59 = arith.constant 0 : index
    %c0_60 = arith.constant 0 : index
    %c0_61 = arith.constant 0 : index
    %162 = vector.load %arg13[%c0_59, %c0_60, %c0_61] : memref<1x32x128xbf16, #tpu.memory_space<vmem>>, vector<1x32x128xbf16>
    %163 = vector.shape_cast %162 : vector<1x32x128xbf16> to vector<32x128xbf16>
    %cst_62 = arith.constant dense<0.000000e+00> : vector<8x128xf32>
    %164 = tpu.matmul %161, %163, %cst_62 {dimension_numbers = #tpu.dot_dimension_numbers<[1], [0], [0], [1], [0, 0, 1, 1], [], []>} : vector<8x32xbf16>, vector<32x128xbf16>, vector<8x128xf32> -> vector<8x128xf32>
    %c0_63 = arith.constant 0 : index
    %c0_64 = arith.constant 0 : index
    %c0_65 = arith.constant 0 : index
    %165 = vector.load %arg14[%c0_63, %c0_64, %c0_65] : memref<1x1x128xf32, #tpu.memory_space<vmem>>, vector<1x1x128xf32>
    %166 = vector.shape_cast %165 : vector<1x1x128xf32> to vector<128xf32>
    %167 = vector.shape_cast %166 : vector<128xf32> to vector<1x128xf32>
    %168 = vector.broadcast %167 : vector<1x128xf32> to vector<8x128xf32>
    %169 = arith.addf %164, %168 : vector<8x128xf32>
    %cst_66 = arith.constant 1.702000e+00 : f32
    %170 = vector.broadcast %cst_66 : f32 to vector<8x128xf32>
    %171 = arith.mulf %170, %169 : vector<8x128xf32>
    %172 = arith.negf %171 : vector<8x128xf32>
    %173 = math.exp %172 : vector<8x128xf32>
    %cst_67 = arith.constant 1.000000e+00 : f32
    %174 = vector.broadcast %cst_67 : f32 to vector<8x128xf32>
    %175 = arith.addf %174, %173 : vector<8x128xf32>
    %176 = arith.divf %174, %175 : vector<8x128xf32>
    %177 = arith.mulf %169, %176 : vector<8x128xf32>
    %178 = arith.truncf %177 : vector<8x128xf32> to vector<8x128xbf16>
    %c0_68 = arith.constant 0 : index
    %c0_69 = arith.constant 0 : index
    %c0_70 = arith.constant 0 : index
    %179 = vector.load %arg15[%c0_68, %c0_69, %c0_70] : memref<1x128x32xbf16, #tpu.memory_space<vmem>>, vector<1x128x32xbf16>
    %180 = vector.shape_cast %179 : vector<1x128x32xbf16> to vector<128x32xbf16>
    %cst_71 = arith.constant dense<0.000000e+00> : vector<8x32xf32>
    %181 = tpu.matmul %178, %180, %cst_71 {dimension_numbers = #tpu.dot_dimension_numbers<[1], [0], [0], [1], [0, 0, 1, 1], [], []>} : vector<8x128xbf16>, vector<128x32xbf16>, vector<8x32xf32> -> vector<8x32xf32>
    %c0_72 = arith.constant 0 : index
    %c0_73 = arith.constant 0 : index
    %c0_74 = arith.constant 0 : index
    %182 = vector.load %arg16[%c0_72, %c0_73, %c0_74] : memref<1x1x32xf32, #tpu.memory_space<vmem>>, vector<1x1x32xf32>
    %183 = vector.shape_cast %182 : vector<1x1x32xf32> to vector<32xf32>
    %184 = vector.shape_cast %183 : vector<32xf32> to vector<1x32xf32>
    %185 = vector.broadcast %184 : vector<1x32xf32> to vector<8x32xf32>
    %186 = arith.addf %181, %185 : vector<8x32xf32>
    %187 = arith.addf %132, %186 : vector<8x32xf32>
    %c0_75 = arith.constant 0 : index
    %c0_76 = arith.constant 0 : index
    %188 = vector.load %arg21[%c0_75, %c0_76] : memref<8x32xf32, #tpu.memory_space<vmem>>, vector<8x32xf32>
    tpu.vector_store %arg21[%c0_75, %c0_76], %187 {strides = array<i32>} : memref<8x32xf32, #tpu.memory_space<vmem>>, vector<8x32xf32>,
    %c1_i32 = arith.constant 1 : i32
    %189 = arith.cmpi eq, %arg1, %c1_i32 : i32
    %190 = arith.extui %189 : i1 to i32
    %c0_i32_77 = arith.constant 0 : i32
    %191 = arith.cmpi ne, %190, %c0_i32_77 : i32
    scf.if %191 {
      %c0_78 = arith.constant 0 : index
      %c0_79 = arith.constant 0 : index
      %192 = vector.load %arg17[%c0_78, %c0_79] : memref<1x32xf32, #tpu.memory_space<vmem>>, vector<1x32xf32>
      %193 = vector.shape_cast %192 : vector<1x32xf32> to vector<32xf32>
      %c0_80 = arith.constant 0 : index
      %c0_81 = arith.constant 0 : index
      %194 = vector.load %arg18[%c0_80, %c0_81] : memref<1x32xf32, #tpu.memory_space<vmem>>, vector<1x32xf32>
      %195 = vector.shape_cast %194 : vector<1x32xf32> to vector<32xf32>
      %cst_82 = arith.constant dense<0.000000e+00> : vector<8xf32>
      %196 = vector.multi_reduction <add>, %187, %cst_82 [1] : vector<8x32xf32> to vector<8xf32>
      %197 = vector.shape_cast %196 : vector<8xf32> to vector<8x1xf32>
      %cst_83 = arith.constant 3.200000e+01 : f32
      %198 = vector.broadcast %cst_83 : f32 to vector<8x1xf32>
      %199 = arith.divf %197, %198 : vector<8x1xf32>
      %200 = vector.broadcast %199 : vector<8x1xf32> to vector<8x32xf32>
      %201 = arith.subf %187, %200 : vector<8x32xf32>
      %202 = arith.mulf %201, %201 : vector<8x32xf32>
      %cst_84 = arith.constant dense<0.000000e+00> : vector<8xf32>
      %203 = vector.multi_reduction <add>, %202, %cst_84 [1] : vector<8x32xf32> to vector<8xf32>
      %204 = vector.shape_cast %203 : vector<8xf32> to vector<8x1xf32>
      %cst_85 = arith.constant 3.200000e+01 : f32
      %205 = vector.broadcast %cst_85 : f32 to vector<8x1xf32>
      %206 = arith.divf %204, %205 : vector<8x1xf32>
      %207 = vector.broadcast %199 : vector<8x1xf32> to vector<8x32xf32>
      %208 = arith.subf %187, %207 : vector<8x32xf32>
      %cst_86 = arith.constant 9.99999974E-6 : f32
      %209 = vector.broadcast %cst_86 : f32 to vector<8x1xf32>
      %210 = arith.addf %206, %209 : vector<8x1xf32>
      %211 = math.rsqrt %210 : vector<8x1xf32>
      %212 = vector.broadcast %211 : vector<8x1xf32> to vector<8x32xf32>
      %213 = arith.mulf %208, %212 : vector<8x32xf32>
      %214 = vector.shape_cast %193 : vector<32xf32> to vector<1x32xf32>
      %215 = vector.broadcast %214 : vector<1x32xf32> to vector<8x32xf32>
      %216 = arith.mulf %213, %215 : vector<8x32xf32>
      %217 = vector.shape_cast %195 : vector<32xf32> to vector<1x32xf32>
      %218 = vector.broadcast %217 : vector<1x32xf32> to vector<8x32xf32>
      %219 = arith.addf %216, %218 : vector<8x32xf32>
      %c0_87 = arith.constant 0 : index
      %c0_88 = arith.constant 0 : index
      %220 = vector.load %arg21[%c0_87, %c0_88] : memref<8x32xf32, #tpu.memory_space<vmem>>, vector<8x32xf32>
      tpu.vector_store %arg21[%c0_87, %c0_88], %219 {strides = array<i32>} : memref<8x32xf32, #tpu.memory_space<vmem>>, vector<8x32xf32>,
      %221 = arith.index_cast %arg0 : i32 to index
      %222 = memref.load %arg2[%221] : memref<2xi32, #tpu.memory_space<smem>>
      %223 = arith.index_cast %222 : i32 to index
      %c0_89 = arith.constant 0 : index
      %224 = vector.load %arg21[%223, %c0_89] : memref<8x32xf32, #tpu.memory_space<vmem>>, vector<1x32xf32>
      %225 = arith.truncf %224 : vector<1x32xf32> to vector<1x32xbf16>
      %c0_90 = arith.constant 0 : index
      %c0_91 = arith.constant 0 : index
      %226 = vector.load %arg19[%c0_90, %c0_91] : memref<32x128xbf16, #tpu.memory_space<vmem>>, vector<32x128xbf16>
      %cst_92 = arith.constant dense<0.000000e+00> : vector<1x128xf32>
      %227 = tpu.matmul %225, %226, %cst_92 {dimension_numbers = #tpu.dot_dimension_numbers<[1], [0], [0], [1], [0, 0, 1, 1], [], []>} : vector<1x32xbf16>, vector<32x128xbf16>, vector<1x128xf32> -> vector<1x128xf32>
      %228 = vector.shape_cast %227 : vector<1x128xf32> to vector<1x128xf32>
      %229 = vector.broadcast %228 : vector<1x128xf32> to vector<8x128xf32>
      %c0_93 = arith.constant 0 : index
      %c0_94 = arith.constant 0 : index
      %c0_95 = arith.constant 0 : index
      %230 = vector.load %arg20[%c0_93, %c0_94, %c0_95] : memref<1x8x128xf32, #tpu.memory_space<vmem>>, vector<1x8x128xf32>
      %231 = vector.shape_cast %230 : vector<1x8x128xf32> to vector<8x128xf32>
      %232 = vector.shape_cast %229 : vector<8x128xf32> to vector<1x8x128xf32>
      tpu.vector_store %arg20[%c0_93, %c0_94, %c0_95], %232 {strides = array<i32>} : memref<1x8x128xf32, #tpu.memory_space<vmem>>, vector<1x8x128xf32>,
    } else {
    }
    return
  }
  func.func @transform_0(%arg0: i32, %arg1: i32, %arg2: memref<2xi32, #tpu.memory_space<smem>>) -> (i32, i32, i32) {
    %c0_i32 = arith.constant 0 : i32
    %c0_i32_0 = arith.constant 0 : i32
    %c0_i32_1 = arith.constant 0 : i32
    return %arg0, %c0_i32, %c0_i32_0 : i32, i32, i32
  }
  func.func @transform_1(%arg0: i32, %arg1: i32, %arg2: memref<2xi32, #tpu.memory_space<smem>>) -> (i32, i32) {
    %c0_i32 = arith.constant 0 : i32
    %c0_i32_0 = arith.constant 0 : i32
    %c0_i32_1 = arith.constant 0 : i32
    return %c0_i32, %c0_i32_0 : i32, i32
  }
  func.func @transform_2(%arg0: i32, %arg1: i32, %arg2: memref<2xi32, #tpu.memory_space<smem>>) -> (i32, i32, i32) {
    %c0_i32 = arith.constant 0 : i32
    %c0_i32_0 = arith.constant 0 : i32
    %c0_i32_1 = arith.constant 0 : i32
    return %arg1, %c0_i32, %c0_i32_0 : i32, i32, i32
  }
  func.func @transform_3(%arg0: i32, %arg1: i32, %arg2: memref<2xi32, #tpu.memory_space<smem>>) -> (i32, i32, i32) {
    %c0_i32 = arith.constant 0 : i32
    %c0_i32_0 = arith.constant 0 : i32
    %c0_i32_1 = arith.constant 0 : i32
    return %arg1, %c0_i32, %c0_i32_0 : i32, i32, i32
  }
  func.func @transform_4(%arg0: i32, %arg1: i32, %arg2: memref<2xi32, #tpu.memory_space<smem>>) -> (i32, i32, i32) {
    %c0_i32 = arith.constant 0 : i32
    %c0_i32_0 = arith.constant 0 : i32
    %c0_i32_1 = arith.constant 0 : i32
    return %arg1, %c0_i32, %c0_i32_0 : i32, i32, i32
  }
  func.func @transform_5(%arg0: i32, %arg1: i32, %arg2: memref<2xi32, #tpu.memory_space<smem>>) -> (i32, i32, i32) {
    %c0_i32 = arith.constant 0 : i32
    %c0_i32_0 = arith.constant 0 : i32
    %c0_i32_1 = arith.constant 0 : i32
    return %arg1, %c0_i32, %c0_i32_0 : i32, i32, i32
  }
  func.func @transform_6(%arg0: i32, %arg1: i32, %arg2: memref<2xi32, #tpu.memory_space<smem>>) -> (i32, i32, i32) {
    %c0_i32 = arith.constant 0 : i32
    %c0_i32_0 = arith.constant 0 : i32
    %c0_i32_1 = arith.constant 0 : i32
    return %arg1, %c0_i32, %c0_i32_0 : i32, i32, i32
  }
  func.func @transform_7(%arg0: i32, %arg1: i32, %arg2: memref<2xi32, #tpu.memory_space<smem>>) -> (i32, i32, i32) {
    %c0_i32 = arith.constant 0 : i32
    %c0_i32_0 = arith.constant 0 : i32
    %c0_i32_1 = arith.constant 0 : i32
    return %arg1, %c0_i32, %c0_i32_0 : i32, i32, i32
  }
  func.func @transform_8(%arg0: i32, %arg1: i32, %arg2: memref<2xi32, #tpu.memory_space<smem>>) -> (i32, i32, i32) {
    %c0_i32 = arith.constant 0 : i32
    %c0_i32_0 = arith.constant 0 : i32
    %c0_i32_1 = arith.constant 0 : i32
    return %arg1, %c0_i32, %c0_i32_0 : i32, i32, i32
  }
  func.func @transform_9(%arg0: i32, %arg1: i32, %arg2: memref<2xi32, #tpu.memory_space<smem>>) -> (i32, i32, i32) {
    %c0_i32 = arith.constant 0 : i32
    %c0_i32_0 = arith.constant 0 : i32
    %c0_i32_1 = arith.constant 0 : i32
    return %arg1, %c0_i32, %c0_i32_0 : i32, i32, i32
  }
  func.func @transform_10(%arg0: i32, %arg1: i32, %arg2: memref<2xi32, #tpu.memory_space<smem>>) -> (i32, i32, i32) {
    %c0_i32 = arith.constant 0 : i32
    %c0_i32_0 = arith.constant 0 : i32
    %c0_i32_1 = arith.constant 0 : i32
    return %arg1, %c0_i32, %c0_i32_0 : i32, i32, i32
  }
  func.func @transform_11(%arg0: i32, %arg1: i32, %arg2: memref<2xi32, #tpu.memory_space<smem>>) -> (i32, i32, i32) {
    %c0_i32 = arith.constant 0 : i32
    %c0_i32_0 = arith.constant 0 : i32
    %c0_i32_1 = arith.constant 0 : i32
    return %arg1, %c0_i32, %c0_i32_0 : i32, i32, i32
  }
  func.func @transform_12(%arg0: i32, %arg1: i32, %arg2: memref<2xi32, #tpu.memory_space<smem>>) -> (i32, i32, i32) {
    %c0_i32 = arith.constant 0 : i32
    %c0_i32_0 = arith.constant 0 : i32
    %c0_i32_1 = arith.constant 0 : i32
    return %arg1, %c0_i32, %c0_i32_0 : i32, i32, i32
  }
  func.func @transform_13(%arg0: i32, %arg1: i32, %arg2: memref<2xi32, #tpu.memory_space<smem>>) -> (i32, i32, i32) {
    %c0_i32 = arith.constant 0 : i32
    %c0_i32_0 = arith.constant 0 : i32
    %c0_i32_1 = arith.constant 0 : i32
    return %arg1, %c0_i32, %c0_i32_0 : i32, i32, i32
  }
  func.func @transform_14(%arg0: i32, %arg1: i32, %arg2: memref<2xi32, #tpu.memory_space<smem>>) -> (i32, i32) {
    %c0_i32 = arith.constant 0 : i32
    %c0_i32_0 = arith.constant 0 : i32
    %c0_i32_1 = arith.constant 0 : i32
    return %c0_i32, %c0_i32_0 : i32, i32
  }
  func.func @transform_15(%arg0: i32, %arg1: i32, %arg2: memref<2xi32, #tpu.memory_space<smem>>) -> (i32, i32) {
    %c0_i32 = arith.constant 0 : i32
    %c0_i32_0 = arith.constant 0 : i32
    %c0_i32_1 = arith.constant 0 : i32
    return %c0_i32, %c0_i32_0 : i32, i32
  }
  func.func @transform_16(%arg0: i32, %arg1: i32, %arg2: memref<2xi32, #tpu.memory_space<smem>>) -> (i32, i32) {
    %c0_i32 = arith.constant 0 : i32
    %c0_i32_0 = arith.constant 0 : i32
    %c0_i32_1 = arith.constant 0 : i32
    return %c0_i32, %c0_i32_0 : i32, i32
  }
  func.func @transform_17(%arg0: i32, %arg1: i32, %arg2: memref<2xi32, #tpu.memory_space<smem>>) -> (i32, i32, i32) {
    %c0_i32 = arith.constant 0 : i32
    %c0_i32_0 = arith.constant 0 : i32
    %c0_i32_1 = arith.constant 0 : i32
    return %arg0, %c0_i32, %c0_i32_0 : i32, i32, i32
  }
}

</mosaic_0001>

<bundles_post_ra>
// kernel: tpu_custom_call.1
= control target key start
LH: loop header
LB: loop body
LE: loop exit
PB: predicated region body
PF: predicated region fallthrough
CT: control target
= control target key end

     0   :  { %s3083_s0 = inlined_call_operand.vmem [shape: s32[2], index: 0, kind: input, shape index: {}]   ;;  %s3084_s1 = inlined_call_operand.vmem [shape: f32[2,8,32], index: 1, kind: input, shape index: {}]   ;;  %s3085_s2 = inlined_call_operand.vmem [shape: f32[8,32], index: 2, kind: input, shape index: {}]   ;;  %s3086_s3 = inlined_call_operand.vmem [shape: f32[2,1,32], index: 3, kind: input, shape index: {}]   ;;  %s3087_s4 = inlined_call_operand.vmem [shape: f32[2,1,32], index: 4, kind: input, shape index: {}]   ;;  %s3088_s5 = inlined_call_operand.vmem [shape: bf16[2,32,96], index: 5, kind: input, shape index: {}]   ;;  %s3089_s6 = inlined_call_operand.vmem [shape: f32[2,1,96], index: 6, kind: input, shape index: {}]   ;;  %s3090_s7 = inlined_call_operand.vmem [shape: bf16[2,32,32], index: 7, kind: input, shape index: {}]   ;;  %s3091_s8 = inlined_call_operand.vmem [shape: f32[2,1,32], index: 8, kind: input, shape index: {}]   ;;  %s3092_s9 = inlined_call_operand.vmem [shape: f32[2,1,32], index: 9, kind: input, shape index: {}]   ;;  %s3093_s10 = inlined_call_operand.vmem [shape: f32[2,1,32], index: 10, kind: input, shape index: {}]   ;;  %s3094_s11 = inlined_call_operand.vmem [shape: bf16[2,32,128], index: 11, kind: input, shape index: {}]   ;;  %s3095_s12 = inlined_call_operand.vmem [shape: f32[2,1,128], index: 12, kind: input, shape index: {}]   ;;  %s3096_s13 = inlined_call_operand.vmem [shape: bf16[2,128,32], index: 13, kind: input, shape index: {}]   ;;  %s3097_s14 = inlined_call_operand.vmem [shape: f32[2,1,32], index: 14, kind: input, shape index: {}]   ;;  %s3098_s15 = inlined_call_operand.vmem [shape: f32[1,32], index: 15, kind: input, shape index: {}]   ;;  %s3099_s16 = inlined_call_operand.vmem [shape: f32[1,32], index: 16, kind: input, shape index: {}]   ;;  %s3100_s17 = inlined_call_operand.vmem [shape: bf16[32,128], index: 17, kind: input, shape index: {}]   ;;  %s3101_s18 = inlined_call_operand.hbm [shape: f32[2,8,128], index: 18, kind: output, shape index: {}]  }
   0x1   :  { %3118 = sst [smem:[#allocation22_spill]] %s3083_s0 }
   0x2   :  { %3119 = sst [smem:[#allocation23_spill]] %s3084_s1  ;;  %s3129_s29 = sld [smem:[#allocation22_spill]] }
   0x3   :  { %3120 = sst [smem:[#allocation24_spill]] %s3085_s2 }
   0x4   :  { %3121 = sst [smem:[#allocation25_spill]] %s3087_s4 }
   0x5   :  { %3122 = sst [smem:[#allocation26_spill]] %s3088_s5 }
   0x6   :  { %3123 = sst [smem:[#allocation27_spill]] %s3090_s7 }
   0x7   :  { %3124 = sst [smem:[#allocation28_spill]] %s3095_s12 }
   0x8   :  { %3125 = sst [smem:[#allocation29_spill]] %s3098_s15  ;;  %s23_s12 = sshll.u32 %s3129_s29, 4  ;;  %s24_s12 = int_to_ptr.vmem [resolvable:$true] %s23_s12 }
   0x9   :  { %3126 = sst [smem:[#allocation30_spill]] %s3099_s16  ;;  %s2477_s30 = scalar_lea.vmem %s24_s12, 16 }
   0xa   :  { %3127 = sst [smem:[#allocation31_spill]] %s3100_s17  ;;  %p2478_p0 = scmp.ne.s32.totalorder %s24_s12, %s2477_s30 }
   0xb   :  { %3128 = sst [smem:[#allocation32_spill]] %s3101_s18  ;;  %p2482_p1 = scmp.lt.s32.totalorder %s24_s12, %s24_s12 }
   0xc   :  { %p2483_p2 = scmp.lt.s32.totalorder %s2477_s30, %s2477_s30 }
   0xe   :  { %p2484_p3 = por %p2483_p2, %p2482_p1 }
  0x10   :  { %p2485_p4 = pnand %p2484_p3, %p2478_p0 }
  0x12   :  { %2488 = shalt.err (!%p2485_p4)  }
  0x13   :  { %s2587_s0 = smov [#allocation4]  }
  0x14   :  { %26 = dma.vmem_to_smem %s24_s12, 16, %s2587_s0, [#allocation3] }
  0x15   :  { %2549 = dma.done.wait [#allocation3], 16 }
  0x16   :  { %2550 = vsyncadd [#allocation3], 4294967280 }
  0x17   :  { %28 = sfence }
  0x18   :  { %29 = vsyncpa [#allocation6], 0 }
  0x19   :  { %31 = vsyncpa [#allocation6 + $0x1], 0  ;;  %s2705_s19 = smov 0   ;;  %s2707_s1 = smov 0  }
  0x1a   :  { %s2709_s20 = smov 0   ;;  %s2711_s21 = smov 0  }
  0x1b   :  { %s2713_s22 = smov 0   ;;  %s2715_s2 = smov 0  }
  0x1c   :  { %s2717_s23 = smov 0   ;;  %s2719_s12 = smov 0  }
  0x1d LB: > { %3130 = sst [smem:[#allocation9_spill]] %s2557_s19  ;;  %s2148_s24 = sadd.s32 4294967295, %s2585_s12   ;;  %s2585_s12 = sphi %s2719_s12, %s37_s12   ;;  %s2581_s23 = sphi %s2717_s23, %s3178_s23   ;;  %s2577_s2 = sphi %s2715_s2, %s3177_s2   ;;  %s2573_s22 = sphi %s2713_s22, %s3176_s22   ;;  %s2569_s21 = sphi %s2711_s21, %s3175_s21   ;;  %s2565_s20 = sphi %s2709_s20, %s3174_s20   ;;  %s2561_s1 = sphi %s2707_s1, %s3173_s1   ;;  %s2557_s19 = sphi %s2705_s19, %s3172_s19  }
  0x1e   : > { %3131 = sst [smem:[#allocation10_spill]] %s2561_s1  ;;  %s2149_s25 = sadd.s32 4294967294, %s2585_s12  }
  0x1f   : > { %3132 = sst [smem:[#allocation11_spill]] %s2565_s20  ;;  %s46_s26 = sadd.s32 1, %s2577_s2 }
  0x20   : > { %3133 = sst [smem:[#allocation12_spill]] %s2573_s22  ;;  %p47_p5 = scmp.ge.s32.totalorder %s46_s26, 2 }
  0x21   : > { %3134 = sst [smem:[#allocation13_spill]] %s2577_s2  ;;  %s49_s27 = sadd.s32 1, %s2581_s23 }
  0x22   : > { %3135 = sst [smem:[#allocation14_spill]] %s2581_s23  ;;  %p488_p6 = scmp.ne.s32.totalorder %s2565_s20, %s2561_s1 }
  0x23   : > { %3136 = sst [smem:[#allocation15_spill]] %s2585_s12  ;;  %p489_p7 = scmp.eq.s32.totalorder %s2148_s24, 3 }
  0x24   : > { %s3180_s26 = smov (%p47_p5, %s46_s26), 0  ;;  %s3182_s27 = smov (!%p47_p5, %s49_s27), %s2581_s23 }
  0x25   : > { %3137 = sst [smem:[#allocation16_spill]] %s3180_s26  ;;  %p2754_p8 = por %p489_p7, %p488_p6 }
  0x26   : > { %p494_p9 = scmp.ne.s32.totalorder %s2561_s1, %s2557_s19  ;;  %p51_p10 = scmp.ge.s32.totalorder %s3182_s27, 2 }
  0x27   : > { %s3138_s28 = scalar_select %p2754_p8, 1, 0 }
  0x28   : > { %p495_p11 = scmp.eq.s32.totalorder %s2149_s25, 3  ;;  %p2152_p12 = scmp.ge.s32.totalorder %s2585_s12, 1 }
  0x29   : > { %3139 = sst [smem:[#allocation17_spill]] %s3138_s28  ;;  %p612_p13 = scmp.lt.s32.totalorder %s2585_s12, 5 }
  0x2a   : > { %s3184_s27 = smov (%p51_p10, %s3182_s27), 0  ;;  %p2764_p0 = por %p495_p11, %p494_p9 }
  0x2b   : > { %3140 = sst [smem:[#allocation18_spill]] %s3184_s27  ;;  %p613_p1 = pnand %p2152_p12, %p612_p13 }
  0x2c   : > { %s3141_s29 = scalar_select %p2764_p0, 1, 0 }
  0x2d   : > { %s475_s30 = ssub.s32 %s2581_s23, %s3184_s27  ;;  %s478_s0 = sadd.s32 1, %s2565_s20 }
  0x2e   : > { %3142 = sst [smem:[#allocation19_spill]] %s3141_s29  ;;  %p476_p2 = scmp.eq.s32.totalorder %s475_s30, 0 }
  0x2f   : > { %616 = sbr.rel (%p613_p1) target bundleno = 3686 (0xe66), region = 88 }
  0x30   : > { %s2772_s24 = scalar_select %p476_p2, %s2565_s20, %s478_s0  }
  0x32   : > { %3143 = sst [smem:[#allocation20_spill]] %s2772_s24 }
  0x36   : > { %s3106_s25 = sand.u32 1, %s2561_s1   ;;  %p707_p3 = scmp.lt.s32.totalorder %s2573_s22, 1 }
  0x37   : > { %s2778_s26 = sshll.u32 %s3106_s25, 3  ;;  %p711_p4 = scmp.lt.s32.totalorder %s2569_s21, 1 }
  0x38   : > { %s708_s2 = scalar_select %p707_p3, %s2573_s22, 1 }
  0x39   : > { %s2783_s29 = scalar_select %p711_p4, %s2569_s21, 1 }
  0x3a   : > { %s2154_s30 = sshll.u32 %s708_s2, 3  ;;  %s3144_s23 = sld [smem:[#allocation23_spill]] }
  0x3b   : > { %s2212_s1 = sshll.u32 %s2783_s29, 4  ;;  %s3146_s5 = sld [smem:[#allocation26_spill]] }
  0x3c   : > { %s3147_s7 = sld [smem:[#allocation27_spill]]  ;;  %s2826_s2 = scalar_lea.vmem %s3094_s11, %s2212_s1 }
  0x3d   : > { %s3149_s27 = sld [smem:[#allocation28_spill]]  ;;  %s754_s18 = scalar_lea.vmem %s3097_s14, %s2783_s29 }
  0x3e   : > { %s706_s15 = scalar_lea.vmem [#allocation5], %s2778_s26  ;;  %p2163_p5 = scmp.ne.s32.totalorder %s2569_s21, 0 }
  0x3f   : > { %s3150_s16 = sld [smem:[#allocation24_spill]] (!%p2163_p5)  ;;  %vm763_vm0 = vcmask (!%p2163_p5), 261120  }
  0x40   : > { %s710_s25 = scalar_lea.vmem %s3144_s23, %s2154_s30  ;;  %759 = sbr.rel (%p2163_p5) target bundleno = 73 (0x49), region = 92 }
  0x41   : > { %s2800_s22 = scalar_lea.vmem %s3146_s5, %s2212_s1  ;;  %s738_s5 = scalar_lea.vmem %s3093_s10, %s2783_s29  ;;  %v760_v0 = vld [vmem:[%s710_s25] sm:$0xff] (!%p2163_p5) }
  0x42   : > { %s2809_s30 = scalar_lea.vmem %s3147_s7, %s2212_s1 }
  0x43   : > { %3148 = sst [smem:[#allocation21_spill]] %s2809_s30  ;;  %s746_s7 = scalar_lea.vmem %s3149_s27, %s2783_s29 }
  0x44   : > { %s2215_s30 = sshll.u32 %s2783_s29, 6 }
  0x45   : > { %s2840_s19 = scalar_lea.vmem %s3096_s13, %s2215_s30  ;;  %v761_v1 = vld [vmem:[%s3150_s16] sm:$0xff] (!%p2163_p5) }
  0x46   : > { %v762_v2 = vadd.f32 (!%p2163_p5), %v761_v1, %v760_v0 }
  0x48   : > { %764 = vst.msk [vmem:[#allocation2] sm:$0xff] %vm763_vm0, %v762_v2 }
  0x49 PF: > { %vm774_vm1 = vcmask 261120   ;;  %v2435_v10 = vld [vmem:[%s2800_s22] sm:$0xff]   ;;  %v2588_v11 = vmov 0.0   ;;  %vm2589_vm2 = vmmov 0   ;;  %v2436_v12 = vld [vmem:[%s2800_s22 + $0x8] sm:$0xff]   ;;  %s3151_s22 = scalar_lea.vmem %s3086_s3, %s2783_s29  ;;  %s3152_s0 = sld [smem:[#allocation25_spill]]  ;;  %v765_v31 = vlaneseq }
  0x4a   : > { %2253 = vmatprep.subr.bf16.mxu0 %v2588_v11  ;;  %2257 = vmatprep.mubr.msk.bf16.mxu0 %vm2589_vm2, %v2588_v11  ;;  %v2164_v17 = vld [vmem:[%s3151_s22] ss:$0 sm:$0xff]  ;;  %s3154_s28 = scalar_lea.vmem %s3089_s6, %s2783_s29  ;;  %s2590_s12 = smov 64   ;;  %vm873_vm3 = vcmask 64512   ;;  %vm1551_vm5 = vcmask 130048   ;;  %vm1553_vm6 = vcmask 195584  }
  0x4b   : > { %2254 = vmatpush3.bf16.msra.mxu0 %v2435_v10  ;;  %2266 = vmatprep.subr.mxu1 %v2588_v11  ;;  %v2166_v23 = vld [vmem:[%s3154_s28] ss:$0 sm:$0xff]  ;;  %s2591_s4 = smov 96   ;;  %s2592_s1 = smov 88   ;;  %v2894_v32 = vshrl.u32 %v765_v31, 7  ;;  %v768_v33 = vand.u32 127, %v765_v31 }
  0x4c   : > { %2255 = vmatprep.subr.bf16.mxu0 %v2588_v11  ;;  %2268 = vmatprep.mubr.msk.f32.mxu1 %vm2589_vm2, %v2588_v11  ;;  %s2593_s16 = smov 120   ;;  %s2594_s25 = smov 80  }
  0x4d   : > { %vm769_vm4 = vcmp.gt.s32.totalorder %v768_v33, %v2894_v32  ;;  %s2595_s27 = smov 112   ;;  %s2596_s22 = smov 72  }
  0x4e   : > { %v770_v35 = vsel %vm769_vm4, -1e+09, %v2588_v11  ;;  %s2597_s30 = smov 104   ;;  %s2598_s17 = smov 48  }
  0x4f   : > { %v2847_v3 = vld [vmem:[#allocation2] sm:$0xff]  ;;  %2256 = vmatpush3.bf16.msra.mxu0 %v2436_v12  ;;  %s3153_s23 = scalar_lea.vmem %s3152_s0, %s2783_s29  ;;  %s2599_s0 = smov 40  }
  0x50   : > { %v775_v4 = vsel %vm774_vm1, %v2847_v3, 0.0  ;;  %2261 = vmatprep.subr.mxu0 %v2588_v11  ;;  %v2165_v19 = vld [vmem:[%s3153_s23] ss:$0 sm:$0xff]  ;;  %s2600_s23 = smov 56   ;;  %s3155_s20 = sld [smem:[#allocation21_spill]] }
  0x51   : > { %776 = vadd.xlane.f32.xlu0 %v775_v4  ;;  %s2601_s24 = smov 8   ;;  %s2602_s28 = smov 16  }
  0x52   : > { %p2202_p6 = scmp.ne.s32.totalorder %s2569_s21, 1 }
  0x53   : > { %vm2605_vm7 = vmmov (!%p2202_p6), 0  }
  0xde   : > { %v777_v5 = vpop.xlane.xlu0 %776 }
  0xdf   : > { %v779_v6 = vmul.f32 0.03125, %v777_v5 }
  0xe1   : > { %v780_v7 = vsub.f32 %v2847_v3, %v779_v6 }
  0xe3   : > { %v781_v8 = vmul.f32 %v780_v7, %v780_v7 }
  0xe5   : > { %v782_v9 = vsel %vm774_vm1, %v781_v8, 0.0 }
  0xe6   : > { %783 = vadd.xlane.f32.xlu0 %v782_v9 }
 0x173   : > { %v784_v13 = vpop.xlane.xlu0 %783 }
 0x174   : > { %v785_v14 = vmul.f32 0.03125, %v784_v13 }
 0x176   : > { %v786_v15 = vadd.f32 1e-05, %v785_v14 }
 0x178   : > { %2449 = vrsqrt.f32 %v786_v15 }
 0x182   : > { %v2450_v16 = vpop.eup %2449 }
 0x183   : > { %v788_v18 = vmul.f32 %v2450_v16, %v780_v7 }
 0x185   : > { %v795_v20 = vmul.f32 %v2164_v17, %v788_v18 }
 0x187   : > { %v802_v21 = vadd.f32 %v2165_v19, %v795_v20 }
 0x189   : > { %v803_v22 = vpack.c.bf16 %v802_v21, %v802_v21 }
 0x18b   : > { %2258 = vmatmul.mubr.msk.bf16.vlgmr.msra.gmra.mrb[0].mxu0 %vm774_vm1, %v803_v22 }
 0x18c   : > { %2263 = vmatprep.mubr.msk.f32.mxu0 %vm2589_vm2, %v2588_v11 }
 0x25e   : > { %v864_v24 = vpop.f32.mrb[0].mxu0 }
 0x25f   : > { %v2881_v25 = vadd.f32 %v2166_v23, %v864_v24  ;;  %v2259_v26 = vpop.f32.mrb[1].mxu0 }
 0x260   : > { %v867_v27 = vpop.f32.mrb[2].mxu0 }
 0x261   : > { %961 = vrot.lane.b32.xlu0 %v2881_v25, %s2590_s12  ;;  %871 = vrot.lane.b32.xlu1 %v2881_v25, %s2591_s4  ;;  %v2260_v28 = vpop.f32.mrb[3].mxu0  ;;  %s2603_s12 = smov 24   ;;  %s3161_s4 = sld [smem:[#allocation29_spill]] (!%p2202_p6) }
 0x265   : > { %1039 = vrot.lane.b32.xlu0 %v2881_v25, %s2592_s1 }
 0x269   : > { %1037 = vrot.lane.b32.xlu0 %v2881_v25, %s2593_s16  ;;  %s3156_s16 = scalar_lea.vmem %s3091_s8, %s2783_s29 }
 0x2d3   : > { %v962_v29 = vpop.permute.xlu0 %961  ;;  %v872_v30 = vpop.permute.xlu1 %871 }
 0x2d4   : > { %2262 = vmatpush3.xpose.msk.msra.mxu0 %vm873_vm3, %v872_v30  ;;  %2267 = vmatpush3.msra.mxu1 %v962_v29 }
 0x2d5   : > { %2271 = vmatprep.subr.mxu1 %v2588_v11  ;;  %2276 = vmatprep.subr.mxu0 %v2588_v11 }
 0x2d7   : > { %2264 = vmatmul.mubr.msk.f32.vlgmr.msra.gmra.mrb[4].mxu0 %vm873_vm3, %v2881_v25  ;;  %v1040_v45 = vpop.permute.xlu0 %1039 }
 0x2d8   : > { %2278 = vmatprep.mubr.msk.f32.mxu0 %vm2589_vm2, %v2588_v11 }
 0x2db   : > { %v1038_v46 = vpop.permute.xlu0 %1037 }
 0x3aa   : > { %v944_v34 = vpop.f32.mrb[4].mxu0 }
 0x3ab   : > { %v948_v36 = vmul.f32 0.35355338, %v944_v34  ;;  %v2265_v37 = vpop.f32.mrb[5].mxu0 }
 0x3ac   : > { %v2437_v37 = vld [vmem:[%s3155_s20] sm:$0xff]  }
 0x3ad   : > { %v949_v38 = vadd.f32 %v948_v36, %v770_v35 }
 0x3af   : > { %v950_v39 = vsel %vm873_vm3, %v949_v38, -inf }
 0x3b0   : > { %951 = vmax.xlane.f32.xlu1 %v950_v39 }
 0x3c1   : > { %1206 = vrot.lane.b32.xlu1 %v2881_v25, %s2594_s25  ;;  %s3162_s25 = sld [smem:[#allocation30_spill]] (!%p2202_p6) }
 0x43d   : > { %v952_v40 = vpop.xlane.xlu1 %951 }
 0x43e   : > { %v953_v41 = vsub.f32 %v949_v38, %v952_v40  ;;  %v2438_v38 = vld [vmem:[%s3155_s20 + $0x8] sm:$0xff]   ;;  %s3160_s20 = sld [smem:[#allocation12_spill]] (!%p2202_p6) }
 0x440   : > { %v954_v42 = vmul.f32 1.442695, %v953_v41 }
 0x441   : > { %v1207_v51 = vpop.permute.xlu1 %1206 }
 0x442   : > { %2451 = vpow2.f32 %v954_v42 }
 0x44c   : > { %v2452_v43 = vpop.eup %2451 }
 0x44d   : > { %v956_v44 = vsel %vm873_vm3, %v2452_v43, 0.0 }
 0x44e   : > { %957 = vadd.xlane.f32.xlu0 %v956_v44 }
 0x464   : > { %1204 = vrot.lane.b32.xlu0 %v2881_v25, %s2595_s27  ;;  %s1875_s27 = sld [smem:[#allocation4 + %s3160_s20]] (!%p2202_p6) }
 0x468   : > { %1373 = vrot.lane.b32.xlu0 %v2881_v25, %s2596_s22  ;;  %s3157_s22 = scalar_lea.vmem %s3092_s9, %s2783_s29 }
 0x46c   : > { %1371 = vrot.lane.b32.xlu0 %v2881_v25, %s2597_s30 }
 0x4db   : > { %v958_v47 = vpop.xlane.xlu0 %957 }
 0x4dc   : > { %2453 = vrcp.f32 %v958_v47 }
 0x4df   : > { %v1205_v50 = vpop.permute.xlu0 %1204 }
 0x4e3   : > { %v1374_v52 = vpop.permute.xlu0 %1373 }
 0x4e6   : > { %v2454_v48 = vpop.eup %2453 }
 0x4e7   : > { %v960_v49 = vmul.f32 %v2454_v48, %v2452_v43  ;;  %v1372_v53 = vpop.permute.xlu0 %1371 }
 0x4e9   : > { %2269 = vmatmul.mubr.msk.f32.vlgmr.msra.gmra.mrb[0].mxu1 %vm873_vm3, %v960_v49 }
 0x4ea   : > { %2272 = vmatpush3.xpose.msk.msra.mxu1 %vm873_vm3, %v1040_v45  ;;  %2273 = vmatprep.mubr.msk.f32.mxu1 %vm2589_vm2, %v2588_v11 }
 0x4eb   : > { %2281 = vmatprep.subr.mxu1 %v2588_v11 }
 0x4ed   : > { %2274 = vmatmul.mubr.msk.f32.vlgmr.msra.gmra.mrb[2].mxu1 %vm873_vm3, %v1038_v46 }
 0x4ee   : > { %2282 = vmatpush3.xpose.msk.msra.mxu1 %vm873_vm3, %v1207_v51  ;;  %2283 = vmatprep.mubr.msk.f32.mxu1 %vm2589_vm2, %v2588_v11 }
 0x4ef   : > { %2291 = vmatprep.subr.mxu1 %v2588_v11 }
 0x4f1   : > { %2284 = vmatmul.mubr.msk.f32.vlgmr.msra.gmra.mrb[4].mxu1 %vm873_vm3, %v1205_v50 }
 0x4f2   : > { %2292 = vmatpush3.xpose.msk.msra.mxu1 %vm873_vm3, %v1374_v52  ;;  %2293 = vmatprep.mubr.msk.f32.mxu1 %vm2589_vm2, %v2588_v11  ;;  %v2182_v52 = vld [vmem:[%s3156_s16] ss:$0 sm:$0xff] }
 0x4f3   : > { %2317 = vmatprep.subr.bf16.mxu1 %v2588_v11 }
 0x4f5   : > { %2294 = vmatmul.mubr.msk.f32.vlgmr.msra.gmra.mrb[6].mxu1 %vm873_vm3, %v1372_v53 }
 0x4f6   : > { %2333 = vmatprep.mubr.msk.bf16.mxu1 %vm2589_vm2, %v2588_v11 }
 0x5bc   : > { %v2922_v54 = vpop.f32.mrb[0].mxu1 }
 0x5bd   : > { %v2270_v55 = vpop.f32.mrb[1].mxu1 }
 0x5c0   : > { %v1111_v56 = vpop.f32.mrb[2].mxu1 }
 0x5c1   : > { %v1115_v57 = vmul.f32 0.35355338, %v1111_v56  ;;  %v2275_v58 = vpop.f32.mrb[3].mxu1 }
 0x5c3   : > { %v1116_v59 = vadd.f32 %v1115_v57, %v770_v35 }
 0x5c4   : > { %v1278_v60 = vpop.f32.mrb[4].mxu1 }
 0x5c5   : > { %v1282_v61 = vmul.f32 0.35355338, %v1278_v60  ;;  %v2285_v62 = vpop.f32.mrb[5].mxu1  ;;  %v1117_v63 = vsel %vm873_vm3, %v1116_v59, -inf }
 0x5c6   : > { %1118 = vmax.xlane.f32.xlu0 %v1117_v63 }
 0x5c7   : > { %v1283_v0 = vadd.f32 %v1282_v61, %v770_v35 }
 0x5c8   : > { %v1445_v1 = vpop.f32.mrb[6].mxu1 }
 0x5c9   : > { %v1449_v2 = vmul.f32 0.35355338, %v1445_v1  ;;  %v2295_v4 = vpop.f32.mrb[7].mxu1  ;;  %v1284_v5 = vsel %vm873_vm3, %v1283_v0, -inf  ;;  %v2439_v1 = vld [vmem:[%s2826_s2] sm:$0xff]  }
 0x5ca   : > { %1285 = vmax.xlane.f32.xlu1 %v1284_v5 }
 0x5cb   : > { %v1450_v6 = vadd.f32 %v1449_v2, %v770_v35 }
 0x5cd   : > { %v1451_v7 = vsel %vm873_vm3, %v1450_v6, -inf }
 0x5ce   : > { %1452 = vmax.xlane.f32.xlu0 %v1451_v7  ;;  %v2186_v7 = vld [vmem:[%s3157_s22] ss:$0 sm:$0xff]  ;;  %s1876_s22 = scalar_lea.vmem (!%p2202_p6), [#allocation2], %s1875_s27 }
 0x5db   : > { %1295 = vrot.lane.b32.xlu1 %v2881_v25, %s2598_s17 }
 0x653   : > { %v1119_v8 = vpop.xlane.xlu0 %1118 }
 0x654   : > { %v1120_v9 = vsub.f32 %v1116_v59, %v1119_v8 }
 0x656   : > { %v1121_v10 = vmul.f32 1.442695, %v1120_v9  ;;  %v2187_v9 = vld [vmem:[%s738_s5] ss:$0 sm:$0xff] }
 0x657   : > { %v1286_v12 = vpop.xlane.xlu1 %1285 }
 0x658   : > { %2455 = vpow2.f32 %v1121_v10  ;;  %v1287_v13 = vsub.f32 %v1283_v0, %v1286_v12 }
 0x65a   : > { %v1288_v14 = vmul.f32 1.442695, %v1287_v13 }
 0x65b   : > { %v1453_v15 = vpop.xlane.xlu0 %1452  ;;  %v1296_v26 = vpop.permute.xlu1 %1295 }
 0x65c   : > { %2457 = vpow2.f32 %v1288_v14  ;;  %v1454_v16 = vsub.f32 %v1450_v6, %v1453_v15  ;;  %v2441_v14 = vld [vmem:[%s2840_s19] sm:$0xff]   ;;  %v2442_v15 = vld [vmem:[%s2840_s19 + $0x8] sm:$0xff]  }
 0x65d   : > { %2318 = vmatpush3.bf16.msra.mxu1 %v2441_v14 }
 0x65e   : > { %v1455_v17 = vmul.f32 1.442695, %v1454_v16  ;;  %2319 = vmatprep.subr.bf16.mxu1 %v2588_v11  ;;  %v2443_v16 = vld [vmem:[%s2840_s19 + $0x10] sm:$0xff]  }
 0x660   : > { %2459 = vpow2.f32 %v1455_v17  ;;  %v2444_v17 = vld [vmem:[%s2840_s19 + $0x18] sm:$0xff]  }
 0x661   : > { %2320 = vmatpush3.bf16.msra.mxu1 %v2442_v15 }
 0x662   : > { %v2456_v18 = vpop.eup %2455  ;;  %2321 = vmatprep.subr.bf16.mxu1 %v2588_v11 }
 0x663   : > { %v1123_v19 = vsel %vm873_vm3, %v2456_v18, 0.0 }
 0x664   : > { %1124 = vadd.xlane.f32.xlu0 %v1123_v19  ;;  %v2446_v19 = vld [vmem:[%s2840_s19 + $0x28] sm:$0xff]  }
 0x665   : > { %2322 = vmatpush3.bf16.msra.mxu1 %v2443_v16 }
 0x666   : > { %v2458_v20 = vpop.eup %2457  ;;  %2323 = vmatprep.subr.bf16.mxu1 %v2588_v11 }
 0x667   : > { %v1290_v21 = vsel %vm873_vm3, %v2458_v20, 0.0 }
 0x668   : > { %1291 = vadd.xlane.f32.xlu0 %v1290_v21  ;;  %v2448_v21 = vld [vmem:[%s2840_s19 + $0x38] sm:$0xff]  }
 0x669   : > { %2324 = vmatpush3.bf16.msra.mxu1 %v2444_v17 }
 0x66a   : > { %v2460_v22 = vpop.eup %2459  ;;  %2325 = vmatprep.subr.bf16.mxu1 %v2588_v11 }
 0x66b   : > { %v1457_v23 = vsel %vm873_vm3, %v2460_v22, 0.0 }
 0x66c   : > { %1458 = vadd.xlane.f32.xlu1 %v1457_v23 }
 0x67d   : > { %1462 = vrot.lane.b32.xlu1 %v2881_v25, %s2599_s0 }
 0x67e   : > { %1128 = vrot.lane.b32.xlu0 %v2881_v25, %s2600_s23 }
 0x6f1   : > { %v1125_v24 = vpop.xlane.xlu0 %1124 }
 0x6f2   : > { %2461 = vrcp.f32 %v1125_v24 }
 0x6f5   : > { %v1292_v27 = vpop.xlane.xlu0 %1291 }
 0x6f6   : > { %2463 = vrcp.f32 %v1292_v27 }
 0x6f9   : > { %v1459_v28 = vpop.xlane.xlu1 %1458  ;;  %v1129_v29 = vpop.permute.xlu0 %1128 }
 0x6fa   : > { %2465 = vrcp.f32 %v1459_v28  ;;  %2277 = vmatpush3.msra.mxu0 %v1129_v29 }
 0x6fb   : > { %2286 = vmatprep.subr.mxu0 %v2588_v11 }
 0x6fc   : > { %v2462_v30 = vpop.eup %2461 }
 0x6fd   : > { %v1127_v31 = vmul.f32 %v2462_v30, %v2456_v18  ;;  %v1463_v34 = vpop.permute.xlu1 %1462  ;;  %v2445_v18 = vld [vmem:[%s2840_s19 + $0x20] sm:$0xff]  }
 0x6fe   : > { %2326 = vmatpush3.bf16.msra.mxu1 %v2445_v18 }
 0x6ff   : > { %2279 = vmatmul.mubr.msk.f32.vlgmr.msra.gmra.mrb[6].mxu0 %vm873_vm3, %v1127_v31  ;;  %2327 = vmatprep.subr.bf16.mxu1 %v2588_v11 }
 0x700   : > { %v2464_v33 = vpop.eup %2463  ;;  %2287 = vmatpush3.msra.mxu0 %v1296_v26  ;;  %2288 = vmatprep.mubr.msk.f32.mxu0 %vm2589_vm2, %v2588_v11 }
 0x701   : > { %v1294_v25 = vmul.f32 %v2464_v33, %v2458_v20  ;;  %2296 = vmatprep.subr.mxu0 %v2588_v11  ;;  %v2447_v20 = vld [vmem:[%s2840_s19 + $0x30] sm:$0xff]  }
 0x702   : > { %2328 = vmatpush3.bf16.msra.mxu1 %v2446_v19 }
 0x703   : > { %2289 = vmatmul.mubr.msk.f32.vlgmr.msra.gmra.mrb[8].mxu0 %vm873_vm3, %v1294_v25  ;;  %2329 = vmatprep.subr.bf16.mxu1 %v2588_v11 }
 0x704   : > { %v2466_v35 = vpop.eup %2465  ;;  %2297 = vmatpush3.msra.mxu0 %v1463_v34  ;;  %2298 = vmatprep.mubr.msk.f32.mxu0 %vm2589_vm2, %v2588_v11 }
 0x705   : > { %v1461_v36 = vmul.f32 %v2466_v35, %v2460_v22  ;;  %2301 = vmatprep.subr.bf16.mxu0 %v2588_v11  ;;  %v2188_v22 = vld [vmem:[%s746_s7] ss:$0 sm:$0xff] }
 0x706   : > { %2330 = vmatpush3.bf16.msra.mxu1 %v2447_v20  ;;  %v2193_v35 = vld [vmem:[%s754_s18] ss:$0 sm:$0xff]  ;;  %s3159_s18 = sld [smem:[#allocation31_spill]] (!%p2202_p6) }
 0x707   : > { %2299 = vmatmul.mubr.msk.f32.vlgmr.msra.gmra.mrb[10].mxu0 %vm873_vm3, %v1461_v36  ;;  %2331 = vmatprep.subr.bf16.mxu1 %v2588_v11 }
 0x708   : > { %2305 = vmatprep.mubr.msk.bf16.mxu0 %vm2589_vm2, %v2588_v11  ;;  %2302 = vmatpush3.bf16.msra.mxu0 %v2437_v37 }
 0x709   : > { %2303 = vmatprep.subr.bf16.mxu0 %v2588_v11 }
 0x70a   : > { %2332 = vmatpush3.bf16.msra.mxu1 %v2448_v21 }
 0x70c   : > { %2304 = vmatpush3.bf16.msra.mxu0 %v2438_v38 }
 0x70d   : > { %2309 = vmatprep.subr.bf16.mxu0 %v2588_v11 }
 0x7d2   : > { %v1200_v39 = vpop.f32.mrb[6].mxu0 }
 0x7d3   : > { %1539 = vrot.lane.b32.xlu1 %v1200_v39, %s2601_s24  ;;  %v2280_v40 = vpop.f32.mrb[7].mxu0 }
 0x7d6   : > { %v1367_v41 = vpop.f32.mrb[8].mxu0 }
 0x7d7   : > { %1543 = vrot.lane.b32.xlu0 %v1367_v41, %s2602_s28  ;;  %v2290_v42 = vpop.f32.mrb[9].mxu0 }
 0x7da   : > { %v1534_v43 = vpop.f32.mrb[10].mxu0 }
 0x7db   : > { %1547 = vrot.lane.b32.xlu1 %v1534_v43, %s2603_s12  ;;  %v2300_v44 = vpop.f32.mrb[11].mxu0 }
 0x845   : > { %v1540_v45 = vpop.permute.xlu1 %1539 }
 0x846   : > { %v1550_v47 = vsel %vm873_vm3, %v2922_v54, %v1540_v45 }
 0x849   : > { %v1544_v46 = vpop.permute.xlu0 %1543 }
 0x84a   : > { %v1552_v48 = vsel %vm1551_vm5, %v1550_v47, %v1544_v46 }
 0x84d   : > { %v1548_v49 = vpop.permute.xlu1 %1547 }
 0x84e   : > { %v1554_v50 = vsel %vm1553_vm6, %v1552_v48, %v1548_v49  ;;  %v2473_v48 = vld [vmem:[%s3159_s18] sm:$0xff] (!%p2202_p6)   ;;  %v2604_v49 = vmov (!%p2202_p6), 0.0  }
 0x84f   : > { %v1555_v51 = vpack.c.bf16 %v1554_v50, %v1554_v50  ;;  %v2474_v50 = vld [vmem:[%s3159_s18 + $0x8] sm:$0xff] (!%p2202_p6)  }
 0x851   : > { %2306 = vmatmul.mubr.msk.bf16.vlgmr.msra.gmra.mrb[12].mxu0 %vm774_vm1, %v1555_v51 }
 0x852   : > { %2313 = vmatprep.mubr.msk.bf16.mxu0 %vm2589_vm2, %v2588_v11  ;;  %2310 = vmatpush3.bf16.msra.mxu0 %v2439_v1 }
 0x853   : > { %2311 = vmatprep.subr.bf16.mxu0 %v2588_v11 }
 0x924   : > { %v1616_v53 = vpop.f32.mrb[12].mxu0 }
 0x925   : > { %v1617_v55 = vadd.f32 %v2182_v52, %v1616_v53  ;;  %v2307_v56 = vpop.f32.mrb[13].mxu0 }
 0x926   : > { %v1619_v54 = vpop.f32.mrb[14].mxu0  ;;  %v2203_v56 = vld [vmem:[%s3161_s4] ss:$0 sm:$0xff] (!%p2202_p6) }
 0x927   : > { %v2960_v57 = vadd.f32 %v1617_v55, %v2847_v3  ;;  %v2308_v58 = vpop.f32.mrb[15].mxu0  ;;  %v2440_v3 = vld [vmem:[%s2826_s2 + $0x8] sm:$0xff]  }
 0x928   : > { %2312 = vmatpush3.bf16.msra.mxu0 %v2440_v3 }
 0x929   : > { %v1625_v59 = vsel %vm774_vm1, %v2960_v57, 0.0  ;;  %2337 = vmatprep.subr.bf16.mxu0 (!%p2202_p6), %v2604_v49 }
 0x92a   : > { %1626 = vadd.xlane.f32.xlu0 %v1625_v59 }
 0x9b7   : > { %v1627_v60 = vpop.xlane.xlu0 %1626 }
 0x9b8   : > { %v1628_v61 = vmul.f32 0.03125, %v1627_v60 }
 0x9ba   : > { %v1629_v62 = vsub.f32 %v2960_v57, %v1628_v61 }
 0x9bc   : > { %v1630_v63 = vmul.f32 %v1629_v62, %v1629_v62 }
 0x9be   : > { %v1631_v0 = vsel %vm774_vm1, %v1630_v63, 0.0 }
 0x9bf   : > { %1632 = vadd.xlane.f32.xlu1 %v1631_v0 }
 0xa4c   : > { %v1633_v2 = vpop.xlane.xlu1 %1632 }
 0xa4d   : > { %v1634_v4 = vmul.f32 0.03125, %v1633_v2 }
 0xa4f   : > { %v1635_v5 = vadd.f32 1e-05, %v1634_v4 }
 0xa51   : > { %2467 = vrsqrt.f32 %v1635_v5 }
 0xa5b   : > { %v2468_v6 = vpop.eup %2467 }
 0xa5c   : > { %v1637_v8 = vmul.f32 %v2468_v6, %v1629_v62  ;;  %v1940_v62 = vsub.s32 (!%p2202_p6), 0, %v2894_v32 }
 0xa5e   : > { %v1644_v10 = vmul.f32 %v2186_v7, %v1637_v8 }
 0xa60   : > { %v1651_v12 = vadd.f32 %v2187_v9, %v1644_v10 }
 0xa62   : > { %v1652_v13 = vpack.c.bf16 %v1651_v12, %v1651_v12 }
 0xa64   : > { %2314 = vmatmul.mubr.msk.bf16.vlgmr.msra.gmra.mrb[16].mxu0 %vm774_vm1, %v1652_v13 }
 0xa65   : > { %2341 = vmatprep.mubr.msk.bf16.mxu0 (!%p2202_p6), %vm2605_vm7, %v2604_v49  ;;  %2338 = vmatpush3.bf16.msra.mxu0 (!%p2202_p6), %v2473_v48 }
 0xa66   : > { %2339 = vmatprep.subr.bf16.mxu0 (!%p2202_p6), %v2604_v49 }
 0xa69   : > { %2340 = vmatpush3.bf16.msra.mxu0 (!%p2202_p6), %v2474_v50 }
 0xb37   : > { %v1713_v23 = vpop.f32.mrb[16].mxu0 }
 0xb38   : > { %v1714_v24 = vadd.f32 %v2188_v22, %v1713_v23  ;;  %v2315_v26 = vpop.f32.mrb[17].mxu0 }
 0xb39   : > { %v1716_v27 = vpop.f32.mrb[18].mxu0 }
 0xb3a   : > { %v2192_v28 = vmul.f32 -1.702, %v1714_v24  ;;  %v2316_v29 = vpop.f32.mrb[19].mxu0 }
 0xb3c   : > { %v1721_v30 = vmul.f32 1.442695, %v2192_v28 }
 0xb3e   : > { %2469 = vpow2.f32 %v1721_v30 }
 0xb48   : > { %v2470_v31 = vpop.eup %2469 }
 0xb49   : > { %v1723_v33 = vadd.f32 1.0, %v2470_v31 }
 0xb4b   : > { %2471 = vrcp.f32 %v1723_v33 }
 0xb55   : > { %v2472_v11 = vpop.eup %2471 }
 0xb56   : > { %v1726_v25 = vmul.f32 %v2472_v11, %v1714_v24 }
 0xb58   : > { %v1727_v34 = vpack.c.bf16 %v1726_v25, %v1726_v25 }
 0xb5a   : > { %2334 = vmatmul.mubr.bf16.vlgmr.msra.gmra.mrb[8].mxu1 %v1727_v34 }
 0xc2c   : > { %1844 = sbr.rel (%p2202_p6) target bundleno = 3660 (0xe4c), region = 96 }
 0xc2d   : > { %v1833_v36 = vpop.f32.mrb[8].mxu1 }
 0xc2e   : > { %v1834_v37 = vadd.f32 %v2193_v35, %v1833_v36  ;;  %v2335_v38 = vpop.f32.mrb[9].mxu1 }
 0xc2f   : > { %v1836_v39 = vpop.f32.mrb[10].mxu1 }
 0xc30   : > { %v1839_v40 = vadd.f32 %v1834_v37, %v2960_v57  ;;  %v2336_v41 = vpop.f32.mrb[11].mxu1  ;;  %v2204_v57 = vld [vmem:[%s3162_s25] ss:$0 sm:$0xff] (!%p2202_p6) }
 0xc32   : > { %1840 = vst.msk [vmem:[#allocation2] sm:$0xff] %vm774_vm1, %v1839_v40  ;;  %v1847_v42 = vsel (!%p2202_p6), %vm774_vm1, %v1839_v40, 0.0 }
 0xc33   : > { %1848 = vadd.xlane.f32.xlu0 %v1847_v42 }
 0xcc0   : > { %v1849_v43 = vpop.xlane.xlu0 %1848 }
 0xcc1   : > { %v1850_v44 = vmul.f32 0.03125, %v1849_v43 }
 0xcc3   : > { %v1851_v45 = vsub.f32 %v1839_v40, %v1850_v44 }
 0xcc5   : > { %v1852_v46 = vmul.f32 %v1851_v45, %v1851_v45 }
 0xcc7   : > { %v1853_v47 = vsel %vm774_vm1, %v1852_v46, 0.0 }
 0xcc8   : > { %1854 = vadd.xlane.f32.xlu0 %v1853_v47 }
 0xd55   : > { %v1855_v51 = vpop.xlane.xlu0 %1854 }
 0xd56   : > { %v1856_v52 = vmul.f32 0.03125, %v1855_v51 }
 0xd58   : > { %v1857_v53 = vadd.f32 1e-05, %v1856_v52 }
 0xd5a   : > { %2475 = vrsqrt.f32 %v1857_v53 }
 0xd64   : > { %v2476_v55 = vpop.eup %2475 }
 0xd65   : > { %v1859_v54 = vmul.f32 %v2476_v55, %v1851_v45 }
 0xd67   : > { %v1866_v58 = vmul.f32 %v2203_v56, %v1859_v54 }
 0xd69   : > { %v1873_v59 = vadd.f32 %v2204_v57, %v1866_v58 }
 0xd6b   : > { %1874 = vst.msk [vmem:[#allocation2] sm:$0xff] %vm774_vm1, %v1873_v59 }
 0xd72   : > { %v1877_v60 = vld [vmem:[%s1876_s22] sm:$0x1] }
 0xd73   : > { %v1878_v61 = vpack.c.bf16 %v1877_v60, %v1877_v60 }
 0xd75   : > { %2342 = vmatmul.mubr.msk.bf16.vlgmr.msra.gmra.mrb[0].mxu0 %vm774_vm1, %v1878_v61 }
 0xe48   : > { %v1932_v63 = vpop.f32.mrb[0].mxu0 }
 0xe49   : > { %v1941_v0 = vrot.slane %v1932_v63, %v1940_v62  ;;  %v2343_v1 = vpop.f32.mrb[1].mxu0 }
 0xe4a   : > { %v1935_v3 = vpop.f32.mrb[2].mxu0 }
 0xe4b   : > { %1942 = vst [vmem:[%s706_s15] sm:$0xff] %v1941_v0  ;;  %v2344_v2 = vpop.f32.mrb[3].mxu0 }
 0xe4c PF: > { %s3163_s30 = sld [smem:[#allocation12_spill]]  ;;  %s3166_s23 = sld [smem:[#allocation32_spill]] }
 0xe4d   : > { %s3164_s17 = sld [smem:[#allocation10_spill]]  ;;  %s1957_s20 = sshll.u32 %s706_s15, 4  ;;  %s1958_s20 = int_to_ptr.vmem [resolvable:$true] %s1957_s20 }
 0xe4e   : > { %s2489_s28 = scalar_lea.vmem %s1958_s20, 128  ;;  %s2606_s12 = smov [#allocation5]  }
 0xe4f   : > { %p2490_p7 = scmp.ne.s32.totalorder %s1958_s20, %s2489_s28  ;;  %s2493_s4 = sshll.u32 %s2606_s12, 4  ;;  %s2494_s4 = int_to_ptr.vmem [resolvable:$false] %s2493_s4 }
 0xe50   : > { %s2495_s1 = scalar_lea.vmem %s2494_s4, 256  ;;  %p2496_p11 = scmp.lt.s32.totalorder %s1958_s20, %s2494_s4 }
 0xe51   : > { %p2491_p9 = pnand %p2490_p7, %p2754_p8  ;;  %p2497_p12 = scmp.lt.s32.totalorder %s2495_s1, %s2489_s28 }
 0xe52   : > { %s2209_s2 = sshll.u32 %s3163_s30, 7  ;;  %s3167_s7 = smov %s3166_s23 }
 0xe53   : > { %s3032_s29 = scalar_lea.hbm %s3166_s23, %s2209_s2  ;;  %s3168_s21 = sand.u32 1, %s3164_s17  }
 0xe54   : > { %s1944_s24 = scalar_lea.sflag [#allocation6], %s3168_s21  ;;  %p2492_p10 = pneg %p2491_p9 }
 0xe55   : > { %p2498_p13 = por %p2497_p12, %p2496_p11 }
 0xe57   : > { %p2499_p1 = pnand %p2498_p13, %p2492_p10 }
 0xe59   : > { %2502 = shalt.err (!%p2499_p1)
}
 0xe5a   : > { %s2503_s26 = scalar_lea.hbm %s3032_s29, 128  ;;  %s2507_s25 = scalar_lea.hbm %s3167_s7, 256 }
 0xe5b   : > { %p2504_p2 = scmp.ne.s32.totalorder %s3032_s29, %s2503_s26  ;;  %p2508_p5 = scmp.lt.u32.totalorder %s3032_s29, %s3167_s7 }
 0xe5c   : > { %p2509_p6 = scmp.lt.u32.totalorder %s2507_s25, %s2503_s26  ;;  %p2511_p9 = scmp.lt.u32.totalorder %s2503_s26, %s3032_s29 }
 0xe5d   : > { %p2505_p3 = pnand %p2504_p2, %p2754_p8 }
 0xe5e   : > { %p2510_p7 = por %p2509_p6, %p2508_p5 }
 0xe5f   : > { %p2506_p4 = pneg %p2505_p3 }
 0xe60   : > { %p2512_p10 = por %p2511_p9, %p2510_p7 }
 0xe62   : > { %p2513_p11 = pnand %p2512_p10, %p2506_p4 }
 0xe64   : > { %2516 = shalt.err (!%p2513_p11)
}
 0xe65   : > { %2345 = dma.vmem_to_hbm [thread:$0]  (%p2754_p8), %s1958_s20, 128, %s3032_s29, %s1944_s24  }
 0xe66 PF: > { %s3169_s30 = sld [smem:[#allocation15_spill]]  ;;  %s3170_s17 = sld [smem:[#allocation9_spill]] }
 0xe6c   : > { %p2351_p12 = scmp.ge.s32.totalorder %s3169_s30, 2  ;;  %s1969_s0 = sand.u32 1, %s3170_s17  }
 0xe6d   : > { %s1970_s19 = scalar_lea.sflag [#allocation6], %s1969_s0 }
 0xe6e   : > { %p2348_p13 = pnand %p2351_p12, %p2764_p0 }
 0xe70   : > { %2552 = dma.done.wait (!%p2348_p13), %s1970_s19, 128  }
 0xe71   : > { %2554 = vsyncadd (!%p2348_p13), %s1970_s19, 4294967168  ;;  %s37_s12 = sadd.s32 1, %s3169_s30   ;;  %s3172_s19 = sld [smem:[#allocation10_spill]] }
 0xe72   : > { %p34_p1 = scmp.ge.s32.totalorder %s37_s12, 6   ;;  %s3173_s1 = sld [smem:[#allocation11_spill]] }
 0xe73   : > { %s3174_s20 = sld [smem:[#allocation20_spill]]  ;;  %s3175_s21 = sld [smem:[#allocation13_spill]] }
 0xe74   : > { %s3176_s22 = sld [smem:[#allocation14_spill]]  ;;  %s3177_s2 = sld [smem:[#allocation16_spill]] }
 0xe75   : > { %s3178_s23 = sld [smem:[#allocation18_spill]]  ;;  %36 = sbr.rel (!%p34_p1) target bundleno = 29 (0x1d), region = 168 }
 0xe7c   :  { %1975 = vsyncpa [#allocation6], 1 }
 0xe7d   :  { %1977 = vsyncpa [#allocation6 + $0x1], 1 }

</bundles_post_ra>
